<compile_context>
chip_gen: v7x
topology: tpu7x:2x2x1
jax: 0.10.0
libtpu: 0.0.40
codegen_flags: <defaults>
</compile_context>

<pallas_src>
import jax
import jax.numpy as jnp
from jax.experimental import pallas as pl
from jax.experimental.pallas import tpu as pltpu


def make_gru_kernel(num_layers, S, B, H):
    """Build a fused multi-layer GRU kernel (no grid; everything in VMEM).

    Kernel args (in order):
      x_ref                      : (S*B, Din0)  flattened layer-0 input
      per layer l (4 refs each)  : wi (Din_l, 3H)  packed input weights [r|z|n]
                                   bg (1, 3H)      folded biases (b_i + b_h for
                                                   r/z; b_in only for n)
                                   wh (H, 3H)      packed recurrent weights
                                   bn (1, H)       hidden n-gate bias (b_hn)
      o_ref                      : (B, S*H)     lane-dense output slab
      gi_scr                     : (S*B, 3H)    VMEM scratch (input projections)
      hs_scr                     : (S*B, H)     VMEM scratch (hidden history)
    """
    f32 = jnp.float32
    bf16 = jnp.bfloat16
    G3 = 3 * H

    def kernel(x_ref, *refs):
        p_refs = refs[: 4 * num_layers]
        o_ref = refs[4 * num_layers]
        gi_scr, hs_scr = refs[4 * num_layers + 1:]

        for l in range(num_layers):
            wi_ref, bg_ref, wh_ref, bn_ref = p_refs[4 * l: 4 * l + 4]

            # ---- Whole-layer input projection (off the serial chain) ------
            bg = jnp.broadcast_to(bg_ref[...], (S * B, G3))
            if wi_ref.shape[0] == 1:
                # Din == 1: pure broadcast-multiply, no MXU pass.
                gi_scr[...] = x_ref[...].astype(f32) * wi_ref[...].astype(f32) + bg
            else:
                gi_scr[...] = jnp.dot(
                    hs_scr[...].astype(bf16), wi_ref[...].astype(bf16),
                    preferred_element_type=f32) + bg

            # ---- Serial recurrence: ONE packed (H,3H) dot per timestep ----
            wh = wh_ref[...].astype(bf16)                          # (H, 3H), hoisted
            b_hn = jnp.broadcast_to(bn_ref[...], (B, H))           # hoisted broadcast
            h = jnp.zeros((B, H), f32)
            for t in range(S):  # static unroll; recurrence is inherently serial
                gi = gi_scr[t * B:(t + 1) * B, :]                  # (B, 3H)
                gh = jnp.dot(h.astype(bf16), wh,
                             preferred_element_type=f32)           # (B, 3H)
                r = jax.nn.sigmoid(gi[:, 0:H] + gh[:, 0:H])
                z = jax.nn.sigmoid(gi[:, H:2 * H] + gh[:, H:2 * H])
                n = jnp.tanh(gi[:, 2 * H:G3] + r * (gh[:, 2 * H:G3] + b_hn))
                h = (1.0 - z) * n + z * h
                hs_scr[t * B:(t + 1) * B, :] = h
            # TODO(synk): nn.GRU inter-layer dropout is an eval-mode no-op; omitted.

        # ---- Epilogue: one lane-dense (B, S*H) store ----------------------
        slab = jnp.concatenate(
            [hs_scr[t * B:(t + 1) * B, :] for t in range(S)], axis=1)  # (B, S*H)
        o_ref[...] = slab.astype(o_ref.dtype)

    return kernel


@jax.jit
def gru_forward(inputs, packed_params):
    """inputs: (S, B, input_size). Returns (B, S, H) = transpose(gru_out, 0, 1)."""
    S, B, Din = inputs.shape
    H = packed_params[0]["wh"].shape[0]
    num_layers = len(packed_params)

    x_flat = inputs.reshape(S * B, Din)          # squeeze-friendly (S*B, 1)
    flat = [x_flat]
    for p in packed_params:
        flat.extend([p["wi"], p["bg"], p["wh"], p["bn"]])

    out2d = pl.pallas_call(
        make_gru_kernel(num_layers, S, B, H),
        out_shape=jax.ShapeDtypeStruct((B, S * H), jnp.float32),
        in_specs=[pl.BlockSpec(memory_space=pltpu.MemorySpace.VMEM)] * len(flat),
        out_specs=pl.BlockSpec(memory_space=pltpu.MemorySpace.VMEM),
        scratch_shapes=[
            pltpu.VMEM((S * B, 3 * H), jnp.float32),   # gi slab
            pltpu.VMEM((S * B, H), jnp.float32),       # hidden-state history
        ],
    )(*flat)
    return out2d.reshape(B, S, H)


def init_gru_params(key, input_size, hidden_dim, num_layers):
    """PyTorch nn.GRU-style params: U(-1/sqrt(H), 1/sqrt(H)); gate order [r,z,n]."""
    params = []
    bound = 1.0 / float(hidden_dim) ** 0.5
    for layer in range(num_layers):
        d_in = input_size if layer == 0 else hidden_dim
        key, k1, k2, k3, k4 = jax.random.split(key, 5)
        params.append(dict(
            w_ih=jax.random.uniform(k1, (3 * hidden_dim, d_in), jnp.float32, -bound, bound),
            w_hh=jax.random.uniform(k2, (3 * hidden_dim, hidden_dim), jnp.float32, -bound, bound),
            b_ih=jax.random.uniform(k3, (3 * hidden_dim,), jnp.float32, -bound, bound),
            b_hh=jax.random.uniform(k4, (3 * hidden_dim,), jnp.float32, -bound, bound),
        ))
    return params


def pack_gru_params(params):
    """Re-lay-out PyTorch-style weights for the kernel.

    wi/wh : transposed, gates packed along lanes [r | z | n].
    bg    : b_ih + b_hh folded for r/z gates; b_in only for n.
    bn    : b_hn kept separate (needed inside r * (h@W_hn + b_hn)).
    """
    packed = []
    for p in params:
        H = p["w_hh"].shape[1]
        b_ih, b_hh = p["b_ih"], p["b_hh"]
        bg = jnp.concatenate([
            b_ih[0:H] + b_hh[0:H],
            b_ih[H:2 * H] + b_hh[H:2 * H],
            b_ih[2 * H:3 * H],
        ])
        packed.append(dict(
            wi=jnp.transpose(p["w_ih"]),            # (Din, 3H)
            wh=jnp.transpose(p["w_hh"]),            # (H, 3H)
            bg=bg.reshape(1, 3 * H),                # (1, 3H)
            bn=b_hh[2 * H:3 * H].reshape(1, H),     # (1, H)
        ))
    return packed


def gru_forward_ref(inputs, params):
    """Pure-JAX reference (lax.scan) with PyTorch nn.GRU semantics, f32."""
    x = inputs
    for p in params:
        w_ih, w_hh, b_ih, b_hh = p["w_ih"], p["w_hh"], p["b_ih"], p["b_hh"]
        H = w_hh.shape[1]

        def step(h, xt, w_ih=w_ih, w_hh=w_hh, b_ih=b_ih, b_hh=b_hh, H=H):
            gi = xt @ w_ih.T + b_ih
            gh = h @ w_hh.T + b_hh
            r = jax.nn.sigmoid(gi[:, 0:H] + gh[:, 0:H])
            z = jax.nn.sigmoid(gi[:, H:2 * H] + gh[:, H:2 * H])
            n = jnp.tanh(gi[:, 2 * H:] + r * gh[:, 2 * H:])
            h_new = (1.0 - z) * n + z * h
            return h_new, h_new

        h0 = jnp.zeros((x.shape[1], H), jnp.float32)
        _, x = jax.lax.scan(step, h0, x)
    return jnp.transpose(x, (1, 0, 2))


if __name__ == "__main__":
    config = {"lstm_hidden_dim": 32, "lstm_num_layers": 2, "dropout": 0.0}
    seq_len, batch, input_size = 8, 2, 1
    hidden = config["lstm_hidden_dim"]
    n_layers = config["lstm_num_layers"]

    key = jax.random.PRNGKey(0)
    key, xkey = jax.random.split(key)
    inputs = jax.random.normal(xkey, (seq_len, batch, input_size), jnp.float32)

    params = init_gru_params(key, input_size, hidden, n_layers)
    packed = pack_gru_params(params)

    out = gru_forward(inputs, packed)
    out = jax.block_until_ready(out)

    ref = gru_forward_ref(inputs, params)
    assert out.shape == (batch, seq_len, hidden), out.shape
    # bf16 MXU operands with f32 accumulation -> loosened tolerance vs f32 ref.
    assert jnp.allclose(out, ref, atol=3e-2, rtol=3e-2), (
        "mismatch vs JAX reference; max abs diff = "
        f"{float(jnp.max(jnp.abs(out - ref)))}")

    print("KERNEL_OK")
</pallas_src>

<mosaic_0001>
module attributes {stable_mosaic.version = 11 : i64} {
  func.func @kernel(%arg0: memref<16x1xf32, #tpu.memory_space<vmem>>, %arg1: memref<1x96xf32, #tpu.memory_space<vmem>>, %arg2: memref<1x96xf32, #tpu.memory_space<vmem>>, %arg3: memref<32x96xf32, #tpu.memory_space<vmem>>, %arg4: memref<1x32xf32, #tpu.memory_space<vmem>>, %arg5: memref<32x96xf32, #tpu.memory_space<vmem>>, %arg6: memref<1x96xf32, #tpu.memory_space<vmem>>, %arg7: memref<32x96xf32, #tpu.memory_space<vmem>>, %arg8: memref<1x32xf32, #tpu.memory_space<vmem>>, %arg9: memref<2x256xf32, #tpu.memory_space<vmem>>, %arg10: memref<16x96xf32, #tpu.memory_space<vmem>>, %arg11: memref<16x32xf32, #tpu.memory_space<vmem>>) attributes {dimension_semantics = [], scalar_prefetch = 0 : i64, scratch_operands = 2 : i64, tpu.core_type = #tpu.core_type<tc>} {
    %c0 = arith.constant 0 : index
    %c0_0 = arith.constant 0 : index
    %0 = vector.load %arg2[%c0, %c0_0] : memref<1x96xf32, #tpu.memory_space<vmem>>, vector<1x96xf32>
    %1 = vector.shape_cast %0 : vector<1x96xf32> to vector<1x96xf32>
    %2 = vector.broadcast %1 : vector<1x96xf32> to vector<16x96xf32>
    %c0_1 = arith.constant 0 : index
    %c0_2 = arith.constant 0 : index
    %3 = vector.load %arg0[%c0_1, %c0_2] : memref<16x1xf32, #tpu.memory_space<vmem>>, vector<16x1xf32>
    %c0_3 = arith.constant 0 : index
    %c0_4 = arith.constant 0 : index
    %4 = vector.load %arg1[%c0_3, %c0_4] : memref<1x96xf32, #tpu.memory_space<vmem>>, vector<1x96xf32>
    %5 = vector.broadcast %3 : vector<16x1xf32> to vector<16x96xf32>
    %6 = vector.broadcast %4 : vector<1x96xf32> to vector<16x96xf32>
    %7 = arith.mulf %5, %6 : vector<16x96xf32>
    %8 = arith.addf %7, %2 : vector<16x96xf32>
    %c0_5 = arith.constant 0 : index
    %c0_6 = arith.constant 0 : index
    %9 = vector.load %arg10[%c0_5, %c0_6] : memref<16x96xf32, #tpu.memory_space<vmem>>, vector<16x96xf32>
    tpu.vector_store %arg10[%c0_5, %c0_6], %8 {strides = array<i32>} : memref<16x96xf32, #tpu.memory_space<vmem>>, vector<16x96xf32>,
    %c0_7 = arith.constant 0 : index
    %c0_8 = arith.constant 0 : index
    %10 = vector.load %arg3[%c0_7, %c0_8] : memref<32x96xf32, #tpu.memory_space<vmem>>, vector<32x96xf32>
    %11 = arith.truncf %10 : vector<32x96xf32> to vector<32x96xbf16>
    %c0_9 = arith.constant 0 : index
    %c0_10 = arith.constant 0 : index
    %12 = vector.load %arg4[%c0_9, %c0_10] : memref<1x32xf32, #tpu.memory_space<vmem>>, vector<1x32xf32>
    %13 = vector.shape_cast %12 : vector<1x32xf32> to vector<1x32xf32>
    %14 = vector.broadcast %13 : vector<1x32xf32> to vector<2x32xf32>
    %cst = arith.constant 0.000000e+00 : f32
    %15 = vector.broadcast %cst : f32 to vector<2x32xf32>
    %c0_11 = arith.constant 0 : index
    %c0_12 = arith.constant 0 : index
    %16 = vector.load %arg10[%c0_11, %c0_12] : memref<16x96xf32, #tpu.memory_space<vmem>>, vector<2x96xf32>
    %17 = arith.truncf %15 : vector<2x32xf32> to vector<2x32xbf16>
    %cst_13 = arith.constant dense<0.000000e+00> : vector<2x96xf32>
    %18 = tpu.matmul %17, %11, %cst_13 {dimension_numbers = #tpu.dot_dimension_numbers<[1], [0], [0], [1], [0, 0, 1, 1], [], []>} : vector<2x32xbf16>, vector<32x96xbf16>, vector<2x96xf32> -> vector<2x96xf32>
    %19 = vector.extract_strided_slice %16 {offsets = [0, 0], sizes = [2, 32], strides = [1, 1]} : vector<2x96xf32> to vector<2x32xf32>
    %20 = vector.extract_strided_slice %18 {offsets = [0, 0], sizes = [2, 32], strides = [1, 1]} : vector<2x96xf32> to vector<2x32xf32>
    %21 = arith.addf %19, %20 : vector<2x32xf32>
    %22 = arith.negf %21 : vector<2x32xf32>
    %23 = math.exp %22 : vector<2x32xf32>
    %cst_14 = arith.constant 1.000000e+00 : f32
    %24 = vector.broadcast %cst_14 : f32 to vector<2x32xf32>
    %25 = arith.addf %24, %23 : vector<2x32xf32>
    %26 = arith.divf %24, %25 : vector<2x32xf32>
    %27 = vector.extract_strided_slice %16 {offsets = [0, 32], sizes = [2, 32], strides = [1, 1]} : vector<2x96xf32> to vector<2x32xf32>
    %28 = vector.extract_strided_slice %18 {offsets = [0, 32], sizes = [2, 32], strides = [1, 1]} : vector<2x96xf32> to vector<2x32xf32>
    %29 = arith.addf %27, %28 : vector<2x32xf32>
    %30 = arith.negf %29 : vector<2x32xf32>
    %31 = math.exp %30 : vector<2x32xf32>
    %cst_15 = arith.constant 1.000000e+00 : f32
    %32 = vector.broadcast %cst_15 : f32 to vector<2x32xf32>
    %33 = arith.addf %32, %31 : vector<2x32xf32>
    %34 = arith.divf %32, %33 : vector<2x32xf32>
    %35 = vector.extract_strided_slice %16 {offsets = [0, 64], sizes = [2, 32], strides = [1, 1]} : vector<2x96xf32> to vector<2x32xf32>
    %36 = vector.extract_strided_slice %18 {offsets = [0, 64], sizes = [2, 32], strides = [1, 1]} : vector<2x96xf32> to vector<2x32xf32>
    %37 = arith.addf %36, %14 : vector<2x32xf32>
    %38 = arith.mulf %26, %37 : vector<2x32xf32>
    %39 = arith.addf %35, %38 : vector<2x32xf32>
    %40 = math.tanh %39 : vector<2x32xf32>
    %cst_16 = arith.constant 1.000000e+00 : f32
    %41 = vector.broadcast %cst_16 : f32 to vector<2x32xf32>
    %42 = arith.subf %41, %34 : vector<2x32xf32>
    %43 = arith.mulf %42, %40 : vector<2x32xf32>
    %44 = arith.mulf %34, %15 : vector<2x32xf32>
    %45 = arith.addf %43, %44 : vector<2x32xf32>
    %c0_17 = arith.constant 0 : index
    %c0_18 = arith.constant 0 : index
    %46 = vector.load %arg11[%c0_17, %c0_18] : memref<16x32xf32, #tpu.memory_space<vmem>>, vector<2x32xf32>
    tpu.vector_store %arg11[%c0_17, %c0_18], %45 {strides = array<i32>} : memref<16x32xf32, #tpu.memory_space<vmem>>, vector<2x32xf32>,
    %c2 = arith.constant 2 : index
    %c0_19 = arith.constant 0 : index
    %47 = vector.load %arg10[%c2, %c0_19] : memref<16x96xf32, #tpu.memory_space<vmem>>, vector<2x96xf32>
    %48 = arith.truncf %45 : vector<2x32xf32> to vector<2x32xbf16>
    %cst_20 = arith.constant dense<0.000000e+00> : vector<2x96xf32>
    %49 = tpu.matmul %48, %11, %cst_20 {dimension_numbers = #tpu.dot_dimension_numbers<[1], [0], [0], [1], [0, 0, 1, 1], [], []>} : vector<2x32xbf16>, vector<32x96xbf16>, vector<2x96xf32> -> vector<2x96xf32>
    %50 = vector.extract_strided_slice %47 {offsets = [0, 0], sizes = [2, 32], strides = [1, 1]} : vector<2x96xf32> to vector<2x32xf32>
    %51 = vector.extract_strided_slice %49 {offsets = [0, 0], sizes = [2, 32], strides = [1, 1]} : vector<2x96xf32> to vector<2x32xf32>
    %52 = arith.addf %50, %51 : vector<2x32xf32>
    %53 = arith.negf %52 : vector<2x32xf32>
    %54 = math.exp %53 : vector<2x32xf32>
    %cst_21 = arith.constant 1.000000e+00 : f32
    %55 = vector.broadcast %cst_21 : f32 to vector<2x32xf32>
    %56 = arith.addf %55, %54 : vector<2x32xf32>
    %57 = arith.divf %55, %56 : vector<2x32xf32>
    %58 = vector.extract_strided_slice %47 {offsets = [0, 32], sizes = [2, 32], strides = [1, 1]} : vector<2x96xf32> to vector<2x32xf32>
    %59 = vector.extract_strided_slice %49 {offsets = [0, 32], sizes = [2, 32], strides = [1, 1]} : vector<2x96xf32> to vector<2x32xf32>
    %60 = arith.addf %58, %59 : vector<2x32xf32>
    %61 = arith.negf %60 : vector<2x32xf32>
    %62 = math.exp %61 : vector<2x32xf32>
    %cst_22 = arith.constant 1.000000e+00 : f32
    %63 = vector.broadcast %cst_22 : f32 to vector<2x32xf32>
    %64 = arith.addf %63, %62 : vector<2x32xf32>
    %65 = arith.divf %63, %64 : vector<2x32xf32>
    %66 = vector.extract_strided_slice %47 {offsets = [0, 64], sizes = [2, 32], strides = [1, 1]} : vector<2x96xf32> to vector<2x32xf32>
    %67 = vector.extract_strided_slice %49 {offsets = [0, 64], sizes = [2, 32], strides = [1, 1]} : vector<2x96xf32> to vector<2x32xf32>
    %68 = arith.addf %67, %14 : vector<2x32xf32>
    %69 = arith.mulf %57, %68 : vector<2x32xf32>
    %70 = arith.addf %66, %69 : vector<2x32xf32>
    %71 = math.tanh %70 : vector<2x32xf32>
    %cst_23 = arith.constant 1.000000e+00 : f32
    %72 = vector.broadcast %cst_23 : f32 to vector<2x32xf32>
    %73 = arith.subf %72, %65 : vector<2x32xf32>
    %74 = arith.mulf %73, %71 : vector<2x32xf32>
    %75 = arith.mulf %65, %45 : vector<2x32xf32>
    %76 = arith.addf %74, %75 : vector<2x32xf32>
    %c2_24 = arith.constant 2 : index
    %c0_25 = arith.constant 0 : index
    %77 = vector.load %arg11[%c2_24, %c0_25] : memref<16x32xf32, #tpu.memory_space<vmem>>, vector<2x32xf32>
    tpu.vector_store %arg11[%c2_24, %c0_25], %76 {strides = array<i32>} : memref<16x32xf32, #tpu.memory_space<vmem>>, vector<2x32xf32>,
    %c4 = arith.constant 4 : index
    %c0_26 = arith.constant 0 : index
    %78 = vector.load %arg10[%c4, %c0_26] : memref<16x96xf32, #tpu.memory_space<vmem>>, vector<2x96xf32>
    %79 = arith.truncf %76 : vector<2x32xf32> to vector<2x32xbf16>
    %cst_27 = arith.constant dense<0.000000e+00> : vector<2x96xf32>
    %80 = tpu.matmul %79, %11, %cst_27 {dimension_numbers = #tpu.dot_dimension_numbers<[1], [0], [0], [1], [0, 0, 1, 1], [], []>} : vector<2x32xbf16>, vector<32x96xbf16>, vector<2x96xf32> -> vector<2x96xf32>
    %81 = vector.extract_strided_slice %78 {offsets = [0, 0], sizes = [2, 32], strides = [1, 1]} : vector<2x96xf32> to vector<2x32xf32>
    %82 = vector.extract_strided_slice %80 {offsets = [0, 0], sizes = [2, 32], strides = [1, 1]} : vector<2x96xf32> to vector<2x32xf32>
    %83 = arith.addf %81, %82 : vector<2x32xf32>
    %84 = arith.negf %83 : vector<2x32xf32>
    %85 = math.exp %84 : vector<2x32xf32>
    %cst_28 = arith.constant 1.000000e+00 : f32
    %86 = vector.broadcast %cst_28 : f32 to vector<2x32xf32>
    %87 = arith.addf %86, %85 : vector<2x32xf32>
    %88 = arith.divf %86, %87 : vector<2x32xf32>
    %89 = vector.extract_strided_slice %78 {offsets = [0, 32], sizes = [2, 32], strides = [1, 1]} : vector<2x96xf32> to vector<2x32xf32>
    %90 = vector.extract_strided_slice %80 {offsets = [0, 32], sizes = [2, 32], strides = [1, 1]} : vector<2x96xf32> to vector<2x32xf32>
    %91 = arith.addf %89, %90 : vector<2x32xf32>
    %92 = arith.negf %91 : vector<2x32xf32>
    %93 = math.exp %92 : vector<2x32xf32>
    %cst_29 = arith.constant 1.000000e+00 : f32
    %94 = vector.broadcast %cst_29 : f32 to vector<2x32xf32>
    %95 = arith.addf %94, %93 : vector<2x32xf32>
    %96 = arith.divf %94, %95 : vector<2x32xf32>
    %97 = vector.extract_strided_slice %78 {offsets = [0, 64], sizes = [2, 32], strides = [1, 1]} : vector<2x96xf32> to vector<2x32xf32>
    %98 = vector.extract_strided_slice %80 {offsets = [0, 64], sizes = [2, 32], strides = [1, 1]} : vector<2x96xf32> to vector<2x32xf32>
    %99 = arith.addf %98, %14 : vector<2x32xf32>
    %100 = arith.mulf %88, %99 : vector<2x32xf32>
    %101 = arith.addf %97, %100 : vector<2x32xf32>
    %102 = math.tanh %101 : vector<2x32xf32>
    %cst_30 = arith.constant 1.000000e+00 : f32
    %103 = vector.broadcast %cst_30 : f32 to vector<2x32xf32>
    %104 = arith.subf %103, %96 : vector<2x32xf32>
    %105 = arith.mulf %104, %102 : vector<2x32xf32>
    %106 = arith.mulf %96, %76 : vector<2x32xf32>
    %107 = arith.addf %105, %106 : vector<2x32xf32>
    %c4_31 = arith.constant 4 : index
    %c0_32 = arith.constant 0 : index
    %108 = vector.load %arg11[%c4_31, %c0_32] : memref<16x32xf32, #tpu.memory_space<vmem>>, vector<2x32xf32>
    tpu.vector_store %arg11[%c4_31, %c0_32], %107 {strides = array<i32>} : memref<16x32xf32, #tpu.memory_space<vmem>>, vector<2x32xf32>,
    %c6 = arith.constant 6 : index
    %c0_33 = arith.constant 0 : index
    %109 = vector.load %arg10[%c6, %c0_33] : memref<16x96xf32, #tpu.memory_space<vmem>>, vector<2x96xf32>
    %110 = arith.truncf %107 : vector<2x32xf32> to vector<2x32xbf16>
    %cst_34 = arith.constant dense<0.000000e+00> : vector<2x96xf32>
    %111 = tpu.matmul %110, %11, %cst_34 {dimension_numbers = #tpu.dot_dimension_numbers<[1], [0], [0], [1], [0, 0, 1, 1], [], []>} : vector<2x32xbf16>, vector<32x96xbf16>, vector<2x96xf32> -> vector<2x96xf32>
    %112 = vector.extract_strided_slice %109 {offsets = [0, 0], sizes = [2, 32], strides = [1, 1]} : vector<2x96xf32> to vector<2x32xf32>
    %113 = vector.extract_strided_slice %111 {offsets = [0, 0], sizes = [2, 32], strides = [1, 1]} : vector<2x96xf32> to vector<2x32xf32>
    %114 = arith.addf %112, %113 : vector<2x32xf32>
    %115 = arith.negf %114 : vector<2x32xf32>
    %116 = math.exp %115 : vector<2x32xf32>
    %cst_35 = arith.constant 1.000000e+00 : f32
    %117 = vector.broadcast %cst_35 : f32 to vector<2x32xf32>
    %118 = arith.addf %117, %116 : vector<2x32xf32>
    %119 = arith.divf %117, %118 : vector<2x32xf32>
    %120 = vector.extract_strided_slice %109 {offsets = [0, 32], sizes = [2, 32], strides = [1, 1]} : vector<2x96xf32> to vector<2x32xf32>
    %121 = vector.extract_strided_slice %111 {offsets = [0, 32], sizes = [2, 32], strides = [1, 1]} : vector<2x96xf32> to vector<2x32xf32>
    %122 = arith.addf %120, %121 : vector<2x32xf32>
    %123 = arith.negf %122 : vector<2x32xf32>
    %124 = math.exp %123 : vector<2x32xf32>
    %cst_36 = arith.constant 1.000000e+00 : f32
    %125 = vector.broadcast %cst_36 : f32 to vector<2x32xf32>
    %126 = arith.addf %125, %124 : vector<2x32xf32>
    %127 = arith.divf %125, %126 : vector<2x32xf32>
    %128 = vector.extract_strided_slice %109 {offsets = [0, 64], sizes = [2, 32], strides = [1, 1]} : vector<2x96xf32> to vector<2x32xf32>
    %129 = vector.extract_strided_slice %111 {offsets = [0, 64], sizes = [2, 32], strides = [1, 1]} : vector<2x96xf32> to vector<2x32xf32>
    %130 = arith.addf %129, %14 : vector<2x32xf32>
    %131 = arith.mulf %119, %130 : vector<2x32xf32>
    %132 = arith.addf %128, %131 : vector<2x32xf32>
    %133 = math.tanh %132 : vector<2x32xf32>
    %cst_37 = arith.constant 1.000000e+00 : f32
    %134 = vector.broadcast %cst_37 : f32 to vector<2x32xf32>
    %135 = arith.subf %134, %127 : vector<2x32xf32>
    %136 = arith.mulf %135, %133 : vector<2x32xf32>
    %137 = arith.mulf %127, %107 : vector<2x32xf32>
    %138 = arith.addf %136, %137 : vector<2x32xf32>
    %c6_38 = arith.constant 6 : index
    %c0_39 = arith.constant 0 : index
    %139 = vector.load %arg11[%c6_38, %c0_39] : memref<16x32xf32, #tpu.memory_space<vmem>>, vector<2x32xf32>
    tpu.vector_store %arg11[%c6_38, %c0_39], %138 {strides = array<i32>} : memref<16x32xf32, #tpu.memory_space<vmem>>, vector<2x32xf32>,
    %c8 = arith.constant 8 : index
    %c0_40 = arith.constant 0 : index
    %140 = vector.load %arg10[%c8, %c0_40] : memref<16x96xf32, #tpu.memory_space<vmem>>, vector<2x96xf32>
    %141 = arith.truncf %138 : vector<2x32xf32> to vector<2x32xbf16>
    %cst_41 = arith.constant dense<0.000000e+00> : vector<2x96xf32>
    %142 = tpu.matmul %141, %11, %cst_41 {dimension_numbers = #tpu.dot_dimension_numbers<[1], [0], [0], [1], [0, 0, 1, 1], [], []>} : vector<2x32xbf16>, vector<32x96xbf16>, vector<2x96xf32> -> vector<2x96xf32>
    %143 = vector.extract_strided_slice %140 {offsets = [0, 0], sizes = [2, 32], strides = [1, 1]} : vector<2x96xf32> to vector<2x32xf32>
    %144 = vector.extract_strided_slice %142 {offsets = [0, 0], sizes = [2, 32], strides = [1, 1]} : vector<2x96xf32> to vector<2x32xf32>
    %145 = arith.addf %143, %144 : vector<2x32xf32>
    %146 = arith.negf %145 : vector<2x32xf32>
    %147 = math.exp %146 : vector<2x32xf32>
    %cst_42 = arith.constant 1.000000e+00 : f32
    %148 = vector.broadcast %cst_42 : f32 to vector<2x32xf32>
    %149 = arith.addf %148, %147 : vector<2x32xf32>
    %150 = arith.divf %148, %149 : vector<2x32xf32>
    %151 = vector.extract_strided_slice %140 {offsets = [0, 32], sizes = [2, 32], strides = [1, 1]} : vector<2x96xf32> to vector<2x32xf32>
    %152 = vector.extract_strided_slice %142 {offsets = [0, 32], sizes = [2, 32], strides = [1, 1]} : vector<2x96xf32> to vector<2x32xf32>
    %153 = arith.addf %151, %152 : vector<2x32xf32>
    %154 = arith.negf %153 : vector<2x32xf32>
    %155 = math.exp %154 : vector<2x32xf32>
    %cst_43 = arith.constant 1.000000e+00 : f32
    %156 = vector.broadcast %cst_43 : f32 to vector<2x32xf32>
    %157 = arith.addf %156, %155 : vector<2x32xf32>
    %158 = arith.divf %156, %157 : vector<2x32xf32>
    %159 = vector.extract_strided_slice %140 {offsets = [0, 64], sizes = [2, 32], strides = [1, 1]} : vector<2x96xf32> to vector<2x32xf32>
    %160 = vector.extract_strided_slice %142 {offsets = [0, 64], sizes = [2, 32], strides = [1, 1]} : vector<2x96xf32> to vector<2x32xf32>
    %161 = arith.addf %160, %14 : vector<2x32xf32>
    %162 = arith.mulf %150, %161 : vector<2x32xf32>
    %163 = arith.addf %159, %162 : vector<2x32xf32>
    %164 = math.tanh %163 : vector<2x32xf32>
    %cst_44 = arith.constant 1.000000e+00 : f32
    %165 = vector.broadcast %cst_44 : f32 to vector<2x32xf32>
    %166 = arith.subf %165, %158 : vector<2x32xf32>
    %167 = arith.mulf %166, %164 : vector<2x32xf32>
    %168 = arith.mulf %158, %138 : vector<2x32xf32>
    %169 = arith.addf %167, %168 : vector<2x32xf32>
    %c8_45 = arith.constant 8 : index
    %c0_46 = arith.constant 0 : index
    %170 = vector.load %arg11[%c8_45, %c0_46] : memref<16x32xf32, #tpu.memory_space<vmem>>, vector<2x32xf32>
    tpu.vector_store %arg11[%c8_45, %c0_46], %169 {strides = array<i32>} : memref<16x32xf32, #tpu.memory_space<vmem>>, vector<2x32xf32>,
    %c10 = arith.constant 10 : index
    %c0_47 = arith.constant 0 : index
    %171 = vector.load %arg10[%c10, %c0_47] : memref<16x96xf32, #tpu.memory_space<vmem>>, vector<2x96xf32>
    %172 = arith.truncf %169 : vector<2x32xf32> to vector<2x32xbf16>
    %cst_48 = arith.constant dense<0.000000e+00> : vector<2x96xf32>
    %173 = tpu.matmul %172, %11, %cst_48 {dimension_numbers = #tpu.dot_dimension_numbers<[1], [0], [0], [1], [0, 0, 1, 1], [], []>} : vector<2x32xbf16>, vector<32x96xbf16>, vector<2x96xf32> -> vector<2x96xf32>
    %174 = vector.extract_strided_slice %171 {offsets = [0, 0], sizes = [2, 32], strides = [1, 1]} : vector<2x96xf32> to vector<2x32xf32>
    %175 = vector.extract_strided_slice %173 {offsets = [0, 0], sizes = [2, 32], strides = [1, 1]} : vector<2x96xf32> to vector<2x32xf32>
    %176 = arith.addf %174, %175 : vector<2x32xf32>
    %177 = arith.negf %176 : vector<2x32xf32>
    %178 = math.exp %177 : vector<2x32xf32>
    %cst_49 = arith.constant 1.000000e+00 : f32
    %179 = vector.broadcast %cst_49 : f32 to vector<2x32xf32>
    %180 = arith.addf %179, %178 : vector<2x32xf32>
    %181 = arith.divf %179, %180 : vector<2x32xf32>
    %182 = vector.extract_strided_slice %171 {offsets = [0, 32], sizes = [2, 32], strides = [1, 1]} : vector<2x96xf32> to vector<2x32xf32>
    %183 = vector.extract_strided_slice %173 {offsets = [0, 32], sizes = [2, 32], strides = [1, 1]} : vector<2x96xf32> to vector<2x32xf32>
    %184 = arith.addf %182, %183 : vector<2x32xf32>
    %185 = arith.negf %184 : vector<2x32xf32>
    %186 = math.exp %185 : vector<2x32xf32>
    %cst_50 = arith.constant 1.000000e+00 : f32
    %187 = vector.broadcast %cst_50 : f32 to vector<2x32xf32>
    %188 = arith.addf %187, %186 : vector<2x32xf32>
    %189 = arith.divf %187, %188 : vector<2x32xf32>
    %190 = vector.extract_strided_slice %171 {offsets = [0, 64], sizes = [2, 32], strides = [1, 1]} : vector<2x96xf32> to vector<2x32xf32>
    %191 = vector.extract_strided_slice %173 {offsets = [0, 64], sizes = [2, 32], strides = [1, 1]} : vector<2x96xf32> to vector<2x32xf32>
    %192 = arith.addf %191, %14 : vector<2x32xf32>
    %193 = arith.mulf %181, %192 : vector<2x32xf32>
    %194 = arith.addf %190, %193 : vector<2x32xf32>
    %195 = math.tanh %194 : vector<2x32xf32>
    %cst_51 = arith.constant 1.000000e+00 : f32
    %196 = vector.broadcast %cst_51 : f32 to vector<2x32xf32>
    %197 = arith.subf %196, %189 : vector<2x32xf32>
    %198 = arith.mulf %197, %195 : vector<2x32xf32>
    %199 = arith.mulf %189, %169 : vector<2x32xf32>
    %200 = arith.addf %198, %199 : vector<2x32xf32>
    %c10_52 = arith.constant 10 : index
    %c0_53 = arith.constant 0 : index
    %201 = vector.load %arg11[%c10_52, %c0_53] : memref<16x32xf32, #tpu.memory_space<vmem>>, vector<2x32xf32>
    tpu.vector_store %arg11[%c10_52, %c0_53], %200 {strides = array<i32>} : memref<16x32xf32, #tpu.memory_space<vmem>>, vector<2x32xf32>,
    %c12 = arith.constant 12 : index
    %c0_54 = arith.constant 0 : index
    %202 = vector.load %arg10[%c12, %c0_54] : memref<16x96xf32, #tpu.memory_space<vmem>>, vector<2x96xf32>
    %203 = arith.truncf %200 : vector<2x32xf32> to vector<2x32xbf16>
    %cst_55 = arith.constant dense<0.000000e+00> : vector<2x96xf32>
    %204 = tpu.matmul %203, %11, %cst_55 {dimension_numbers = #tpu.dot_dimension_numbers<[1], [0], [0], [1], [0, 0, 1, 1], [], []>} : vector<2x32xbf16>, vector<32x96xbf16>, vector<2x96xf32> -> vector<2x96xf32>
    %205 = vector.extract_strided_slice %202 {offsets = [0, 0], sizes = [2, 32], strides = [1, 1]} : vector<2x96xf32> to vector<2x32xf32>
    %206 = vector.extract_strided_slice %204 {offsets = [0, 0], sizes = [2, 32], strides = [1, 1]} : vector<2x96xf32> to vector<2x32xf32>
    %207 = arith.addf %205, %206 : vector<2x32xf32>
    %208 = arith.negf %207 : vector<2x32xf32>
    %209 = math.exp %208 : vector<2x32xf32>
    %cst_56 = arith.constant 1.000000e+00 : f32
    %210 = vector.broadcast %cst_56 : f32 to vector<2x32xf32>
    %211 = arith.addf %210, %209 : vector<2x32xf32>
    %212 = arith.divf %210, %211 : vector<2x32xf32>
    %213 = vector.extract_strided_slice %202 {offsets = [0, 32], sizes = [2, 32], strides = [1, 1]} : vector<2x96xf32> to vector<2x32xf32>
    %214 = vector.extract_strided_slice %204 {offsets = [0, 32], sizes = [2, 32], strides = [1, 1]} : vector<2x96xf32> to vector<2x32xf32>
    %215 = arith.addf %213, %214 : vector<2x32xf32>
    %216 = arith.negf %215 : vector<2x32xf32>
    %217 = math.exp %216 : vector<2x32xf32>
    %cst_57 = arith.constant 1.000000e+00 : f32
    %218 = vector.broadcast %cst_57 : f32 to vector<2x32xf32>
    %219 = arith.addf %218, %217 : vector<2x32xf32>
    %220 = arith.divf %218, %219 : vector<2x32xf32>
    %221 = vector.extract_strided_slice %202 {offsets = [0, 64], sizes = [2, 32], strides = [1, 1]} : vector<2x96xf32> to vector<2x32xf32>
    %222 = vector.extract_strided_slice %204 {offsets = [0, 64], sizes = [2, 32], strides = [1, 1]} : vector<2x96xf32> to vector<2x32xf32>
    %223 = arith.addf %222, %14 : vector<2x32xf32>
    %224 = arith.mulf %212, %223 : vector<2x32xf32>
    %225 = arith.addf %221, %224 : vector<2x32xf32>
    %226 = math.tanh %225 : vector<2x32xf32>
    %cst_58 = arith.constant 1.000000e+00 : f32
    %227 = vector.broadcast %cst_58 : f32 to vector<2x32xf32>
    %228 = arith.subf %227, %220 : vector<2x32xf32>
    %229 = arith.mulf %228, %226 : vector<2x32xf32>
    %230 = arith.mulf %220, %200 : vector<2x32xf32>
    %231 = arith.addf %229, %230 : vector<2x32xf32>
    %c12_59 = arith.constant 12 : index
    %c0_60 = arith.constant 0 : index
    %232 = vector.load %arg11[%c12_59, %c0_60] : memref<16x32xf32, #tpu.memory_space<vmem>>, vector<2x32xf32>
    tpu.vector_store %arg11[%c12_59, %c0_60], %231 {strides = array<i32>} : memref<16x32xf32, #tpu.memory_space<vmem>>, vector<2x32xf32>,
    %c14 = arith.constant 14 : index
    %c0_61 = arith.constant 0 : index
    %233 = vector.load %arg10[%c14, %c0_61] : memref<16x96xf32, #tpu.memory_space<vmem>>, vector<2x96xf32>
    %234 = arith.truncf %231 : vector<2x32xf32> to vector<2x32xbf16>
    %cst_62 = arith.constant dense<0.000000e+00> : vector<2x96xf32>
    %235 = tpu.matmul %234, %11, %cst_62 {dimension_numbers = #tpu.dot_dimension_numbers<[1], [0], [0], [1], [0, 0, 1, 1], [], []>} : vector<2x32xbf16>, vector<32x96xbf16>, vector<2x96xf32> -> vector<2x96xf32>
    %236 = vector.extract_strided_slice %233 {offsets = [0, 0], sizes = [2, 32], strides = [1, 1]} : vector<2x96xf32> to vector<2x32xf32>
    %237 = vector.extract_strided_slice %235 {offsets = [0, 0], sizes = [2, 32], strides = [1, 1]} : vector<2x96xf32> to vector<2x32xf32>
    %238 = arith.addf %236, %237 : vector<2x32xf32>
    %239 = arith.negf %238 : vector<2x32xf32>
    %240 = math.exp %239 : vector<2x32xf32>
    %cst_63 = arith.constant 1.000000e+00 : f32
    %241 = vector.broadcast %cst_63 : f32 to vector<2x32xf32>
    %242 = arith.addf %241, %240 : vector<2x32xf32>
    %243 = arith.divf %241, %242 : vector<2x32xf32>
    %244 = vector.extract_strided_slice %233 {offsets = [0, 32], sizes = [2, 32], strides = [1, 1]} : vector<2x96xf32> to vector<2x32xf32>
    %245 = vector.extract_strided_slice %235 {offsets = [0, 32], sizes = [2, 32], strides = [1, 1]} : vector<2x96xf32> to vector<2x32xf32>
    %246 = arith.addf %244, %245 : vector<2x32xf32>
    %247 = arith.negf %246 : vector<2x32xf32>
    %248 = math.exp %247 : vector<2x32xf32>
    %cst_64 = arith.constant 1.000000e+00 : f32
    %249 = vector.broadcast %cst_64 : f32 to vector<2x32xf32>
    %250 = arith.addf %249, %248 : vector<2x32xf32>
    %251 = arith.divf %249, %250 : vector<2x32xf32>
    %252 = vector.extract_strided_slice %233 {offsets = [0, 64], sizes = [2, 32], strides = [1, 1]} : vector<2x96xf32> to vector<2x32xf32>
    %253 = vector.extract_strided_slice %235 {offsets = [0, 64], sizes = [2, 32], strides = [1, 1]} : vector<2x96xf32> to vector<2x32xf32>
    %254 = arith.addf %253, %14 : vector<2x32xf32>
    %255 = arith.mulf %243, %254 : vector<2x32xf32>
    %256 = arith.addf %252, %255 : vector<2x32xf32>
    %257 = math.tanh %256 : vector<2x32xf32>
    %cst_65 = arith.constant 1.000000e+00 : f32
    %258 = vector.broadcast %cst_65 : f32 to vector<2x32xf32>
    %259 = arith.subf %258, %251 : vector<2x32xf32>
    %260 = arith.mulf %259, %257 : vector<2x32xf32>
    %261 = arith.mulf %251, %231 : vector<2x32xf32>
    %262 = arith.addf %260, %261 : vector<2x32xf32>
    %c14_66 = arith.constant 14 : index
    %c0_67 = arith.constant 0 : index
    %263 = vector.load %arg11[%c14_66, %c0_67] : memref<16x32xf32, #tpu.memory_space<vmem>>, vector<2x32xf32>
    tpu.vector_store %arg11[%c14_66, %c0_67], %262 {strides = array<i32>} : memref<16x32xf32, #tpu.memory_space<vmem>>, vector<2x32xf32>,
    %c0_68 = arith.constant 0 : index
    %c0_69 = arith.constant 0 : index
    %264 = vector.load %arg6[%c0_68, %c0_69] : memref<1x96xf32, #tpu.memory_space<vmem>>, vector<1x96xf32>
    %265 = vector.shape_cast %264 : vector<1x96xf32> to vector<1x96xf32>
    %266 = vector.broadcast %265 : vector<1x96xf32> to vector<16x96xf32>
    %c0_70 = arith.constant 0 : index
    %c0_71 = arith.constant 0 : index
    %267 = vector.load %arg11[%c0_70, %c0_71] : memref<16x32xf32, #tpu.memory_space<vmem>>, vector<16x32xf32>
    %268 = arith.truncf %267 : vector<16x32xf32> to vector<16x32xbf16>
    %c0_72 = arith.constant 0 : index
    %c0_73 = arith.constant 0 : index
    %269 = vector.load %arg5[%c0_72, %c0_73] : memref<32x96xf32, #tpu.memory_space<vmem>>, vector<32x96xf32>
    %270 = arith.truncf %269 : vector<32x96xf32> to vector<32x96xbf16>
    %cst_74 = arith.constant dense<0.000000e+00> : vector<16x96xf32>
    %271 = tpu.matmul %268, %270, %cst_74 {dimension_numbers = #tpu.dot_dimension_numbers<[1], [0], [0], [1], [0, 0, 1, 1], [], []>} : vector<16x32xbf16>, vector<32x96xbf16>, vector<16x96xf32> -> vector<16x96xf32>
    %272 = arith.addf %271, %266 : vector<16x96xf32>
    %c0_75 = arith.constant 0 : index
    %c0_76 = arith.constant 0 : index
    %273 = vector.load %arg10[%c0_75, %c0_76] : memref<16x96xf32, #tpu.memory_space<vmem>>, vector<16x96xf32>
    tpu.vector_store %arg10[%c0_75, %c0_76], %272 {strides = array<i32>} : memref<16x96xf32, #tpu.memory_space<vmem>>, vector<16x96xf32>,
    %c0_77 = arith.constant 0 : index
    %c0_78 = arith.constant 0 : index
    %274 = vector.load %arg7[%c0_77, %c0_78] : memref<32x96xf32, #tpu.memory_space<vmem>>, vector<32x96xf32>
    %275 = arith.truncf %274 : vector<32x96xf32> to vector<32x96xbf16>
    %c0_79 = arith.constant 0 : index
    %c0_80 = arith.constant 0 : index
    %276 = vector.load %arg8[%c0_79, %c0_80] : memref<1x32xf32, #tpu.memory_space<vmem>>, vector<1x32xf32>
    %277 = vector.shape_cast %276 : vector<1x32xf32> to vector<1x32xf32>
    %278 = vector.broadcast %277 : vector<1x32xf32> to vector<2x32xf32>
    %cst_81 = arith.constant 0.000000e+00 : f32
    %279 = vector.broadcast %cst_81 : f32 to vector<2x32xf32>
    %c0_82 = arith.constant 0 : index
    %c0_83 = arith.constant 0 : index
    %280 = vector.load %arg10[%c0_82, %c0_83] : memref<16x96xf32, #tpu.memory_space<vmem>>, vector<2x96xf32>
    %281 = arith.truncf %279 : vector<2x32xf32> to vector<2x32xbf16>
    %cst_84 = arith.constant dense<0.000000e+00> : vector<2x96xf32>
    %282 = tpu.matmul %281, %275, %cst_84 {dimension_numbers = #tpu.dot_dimension_numbers<[1], [0], [0], [1], [0, 0, 1, 1], [], []>} : vector<2x32xbf16>, vector<32x96xbf16>, vector<2x96xf32> -> vector<2x96xf32>
    %283 = vector.extract_strided_slice %280 {offsets = [0, 0], sizes = [2, 32], strides = [1, 1]} : vector<2x96xf32> to vector<2x32xf32>
    %284 = vector.extract_strided_slice %282 {offsets = [0, 0], sizes = [2, 32], strides = [1, 1]} : vector<2x96xf32> to vector<2x32xf32>
    %285 = arith.addf %283, %284 : vector<2x32xf32>
    %286 = arith.negf %285 : vector<2x32xf32>
    %287 = math.exp %286 : vector<2x32xf32>
    %cst_85 = arith.constant 1.000000e+00 : f32
    %288 = vector.broadcast %cst_85 : f32 to vector<2x32xf32>
    %289 = arith.addf %288, %287 : vector<2x32xf32>
    %290 = arith.divf %288, %289 : vector<2x32xf32>
    %291 = vector.extract_strided_slice %280 {offsets = [0, 32], sizes = [2, 32], strides = [1, 1]} : vector<2x96xf32> to vector<2x32xf32>
    %292 = vector.extract_strided_slice %282 {offsets = [0, 32], sizes = [2, 32], strides = [1, 1]} : vector<2x96xf32> to vector<2x32xf32>
    %293 = arith.addf %291, %292 : vector<2x32xf32>
    %294 = arith.negf %293 : vector<2x32xf32>
    %295 = math.exp %294 : vector<2x32xf32>
    %cst_86 = arith.constant 1.000000e+00 : f32
    %296 = vector.broadcast %cst_86 : f32 to vector<2x32xf32>
    %297 = arith.addf %296, %295 : vector<2x32xf32>
    %298 = arith.divf %296, %297 : vector<2x32xf32>
    %299 = vector.extract_strided_slice %280 {offsets = [0, 64], sizes = [2, 32], strides = [1, 1]} : vector<2x96xf32> to vector<2x32xf32>
    %300 = vector.extract_strided_slice %282 {offsets = [0, 64], sizes = [2, 32], strides = [1, 1]} : vector<2x96xf32> to vector<2x32xf32>
    %301 = arith.addf %300, %278 : vector<2x32xf32>
    %302 = arith.mulf %290, %301 : vector<2x32xf32>
    %303 = arith.addf %299, %302 : vector<2x32xf32>
    %304 = math.tanh %303 : vector<2x32xf32>
    %cst_87 = arith.constant 1.000000e+00 : f32
    %305 = vector.broadcast %cst_87 : f32 to vector<2x32xf32>
    %306 = arith.subf %305, %298 : vector<2x32xf32>
    %307 = arith.mulf %306, %304 : vector<2x32xf32>
    %308 = arith.mulf %298, %279 : vector<2x32xf32>
    %309 = arith.addf %307, %308 : vector<2x32xf32>
    %c0_88 = arith.constant 0 : index
    %c0_89 = arith.constant 0 : index
    %310 = vector.load %arg11[%c0_88, %c0_89] : memref<16x32xf32, #tpu.memory_space<vmem>>, vector<2x32xf32>
    tpu.vector_store %arg11[%c0_88, %c0_89], %309 {strides = array<i32>} : memref<16x32xf32, #tpu.memory_space<vmem>>, vector<2x32xf32>,
    %c2_90 = arith.constant 2 : index
    %c0_91 = arith.constant 0 : index
    %311 = vector.load %arg10[%c2_90, %c0_91] : memref<16x96xf32, #tpu.memory_space<vmem>>, vector<2x96xf32>
    %312 = arith.truncf %309 : vector<2x32xf32> to vector<2x32xbf16>
    %cst_92 = arith.constant dense<0.000000e+00> : vector<2x96xf32>
    %313 = tpu.matmul %312, %275, %cst_92 {dimension_numbers = #tpu.dot_dimension_numbers<[1], [0], [0], [1], [0, 0, 1, 1], [], []>} : vector<2x32xbf16>, vector<32x96xbf16>, vector<2x96xf32> -> vector<2x96xf32>
    %314 = vector.extract_strided_slice %311 {offsets = [0, 0], sizes = [2, 32], strides = [1, 1]} : vector<2x96xf32> to vector<2x32xf32>
    %315 = vector.extract_strided_slice %313 {offsets = [0, 0], sizes = [2, 32], strides = [1, 1]} : vector<2x96xf32> to vector<2x32xf32>
    %316 = arith.addf %314, %315 : vector<2x32xf32>
    %317 = arith.negf %316 : vector<2x32xf32>
    %318 = math.exp %317 : vector<2x32xf32>
    %cst_93 = arith.constant 1.000000e+00 : f32
    %319 = vector.broadcast %cst_93 : f32 to vector<2x32xf32>
    %320 = arith.addf %319, %318 : vector<2x32xf32>
    %321 = arith.divf %319, %320 : vector<2x32xf32>
    %322 = vector.extract_strided_slice %311 {offsets = [0, 32], sizes = [2, 32], strides = [1, 1]} : vector<2x96xf32> to vector<2x32xf32>
    %323 = vector.extract_strided_slice %313 {offsets = [0, 32], sizes = [2, 32], strides = [1, 1]} : vector<2x96xf32> to vector<2x32xf32>
    %324 = arith.addf %322, %323 : vector<2x32xf32>
    %325 = arith.negf %324 : vector<2x32xf32>
    %326 = math.exp %325 : vector<2x32xf32>
    %cst_94 = arith.constant 1.000000e+00 : f32
    %327 = vector.broadcast %cst_94 : f32 to vector<2x32xf32>
    %328 = arith.addf %327, %326 : vector<2x32xf32>
    %329 = arith.divf %327, %328 : vector<2x32xf32>
    %330 = vector.extract_strided_slice %311 {offsets = [0, 64], sizes = [2, 32], strides = [1, 1]} : vector<2x96xf32> to vector<2x32xf32>
    %331 = vector.extract_strided_slice %313 {offsets = [0, 64], sizes = [2, 32], strides = [1, 1]} : vector<2x96xf32> to vector<2x32xf32>
    %332 = arith.addf %331, %278 : vector<2x32xf32>
    %333 = arith.mulf %321, %332 : vector<2x32xf32>
    %334 = arith.addf %330, %333 : vector<2x32xf32>
    %335 = math.tanh %334 : vector<2x32xf32>
    %cst_95 = arith.constant 1.000000e+00 : f32
    %336 = vector.broadcast %cst_95 : f32 to vector<2x32xf32>
    %337 = arith.subf %336, %329 : vector<2x32xf32>
    %338 = arith.mulf %337, %335 : vector<2x32xf32>
    %339 = arith.mulf %329, %309 : vector<2x32xf32>
    %340 = arith.addf %338, %339 : vector<2x32xf32>
    %c2_96 = arith.constant 2 : index
    %c0_97 = arith.constant 0 : index
    %341 = vector.load %arg11[%c2_96, %c0_97] : memref<16x32xf32, #tpu.memory_space<vmem>>, vector<2x32xf32>
    tpu.vector_store %arg11[%c2_96, %c0_97], %340 {strides = array<i32>} : memref<16x32xf32, #tpu.memory_space<vmem>>, vector<2x32xf32>,
    %c4_98 = arith.constant 4 : index
    %c0_99 = arith.constant 0 : index
    %342 = vector.load %arg10[%c4_98, %c0_99] : memref<16x96xf32, #tpu.memory_space<vmem>>, vector<2x96xf32>
    %343 = arith.truncf %340 : vector<2x32xf32> to vector<2x32xbf16>
    %cst_100 = arith.constant dense<0.000000e+00> : vector<2x96xf32>
    %344 = tpu.matmul %343, %275, %cst_100 {dimension_numbers = #tpu.dot_dimension_numbers<[1], [0], [0], [1], [0, 0, 1, 1], [], []>} : vector<2x32xbf16>, vector<32x96xbf16>, vector<2x96xf32> -> vector<2x96xf32>
    %345 = vector.extract_strided_slice %342 {offsets = [0, 0], sizes = [2, 32], strides = [1, 1]} : vector<2x96xf32> to vector<2x32xf32>
    %346 = vector.extract_strided_slice %344 {offsets = [0, 0], sizes = [2, 32], strides = [1, 1]} : vector<2x96xf32> to vector<2x32xf32>
    %347 = arith.addf %345, %346 : vector<2x32xf32>
    %348 = arith.negf %347 : vector<2x32xf32>
    %349 = math.exp %348 : vector<2x32xf32>
    %cst_101 = arith.constant 1.000000e+00 : f32
    %350 = vector.broadcast %cst_101 : f32 to vector<2x32xf32>
    %351 = arith.addf %350, %349 : vector<2x32xf32>
    %352 = arith.divf %350, %351 : vector<2x32xf32>
    %353 = vector.extract_strided_slice %342 {offsets = [0, 32], sizes = [2, 32], strides = [1, 1]} : vector<2x96xf32> to vector<2x32xf32>
    %354 = vector.extract_strided_slice %344 {offsets = [0, 32], sizes = [2, 32], strides = [1, 1]} : vector<2x96xf32> to vector<2x32xf32>
    %355 = arith.addf %353, %354 : vector<2x32xf32>
    %356 = arith.negf %355 : vector<2x32xf32>
    %357 = math.exp %356 : vector<2x32xf32>
    %cst_102 = arith.constant 1.000000e+00 : f32
    %358 = vector.broadcast %cst_102 : f32 to vector<2x32xf32>
    %359 = arith.addf %358, %357 : vector<2x32xf32>
    %360 = arith.divf %358, %359 : vector<2x32xf32>
    %361 = vector.extract_strided_slice %342 {offsets = [0, 64], sizes = [2, 32], strides = [1, 1]} : vector<2x96xf32> to vector<2x32xf32>
    %362 = vector.extract_strided_slice %344 {offsets = [0, 64], sizes = [2, 32], strides = [1, 1]} : vector<2x96xf32> to vector<2x32xf32>
    %363 = arith.addf %362, %278 : vector<2x32xf32>
    %364 = arith.mulf %352, %363 : vector<2x32xf32>
    %365 = arith.addf %361, %364 : vector<2x32xf32>
    %366 = math.tanh %365 : vector<2x32xf32>
    %cst_103 = arith.constant 1.000000e+00 : f32
    %367 = vector.broadcast %cst_103 : f32 to vector<2x32xf32>
    %368 = arith.subf %367, %360 : vector<2x32xf32>
    %369 = arith.mulf %368, %366 : vector<2x32xf32>
    %370 = arith.mulf %360, %340 : vector<2x32xf32>
    %371 = arith.addf %369, %370 : vector<2x32xf32>
    %c4_104 = arith.constant 4 : index
    %c0_105 = arith.constant 0 : index
    %372 = vector.load %arg11[%c4_104, %c0_105] : memref<16x32xf32, #tpu.memory_space<vmem>>, vector<2x32xf32>
    tpu.vector_store %arg11[%c4_104, %c0_105], %371 {strides = array<i32>} : memref<16x32xf32, #tpu.memory_space<vmem>>, vector<2x32xf32>,
    %c6_106 = arith.constant 6 : index
    %c0_107 = arith.constant 0 : index
    %373 = vector.load %arg10[%c6_106, %c0_107] : memref<16x96xf32, #tpu.memory_space<vmem>>, vector<2x96xf32>
    %374 = arith.truncf %371 : vector<2x32xf32> to vector<2x32xbf16>
    %cst_108 = arith.constant dense<0.000000e+00> : vector<2x96xf32>
    %375 = tpu.matmul %374, %275, %cst_108 {dimension_numbers = #tpu.dot_dimension_numbers<[1], [0], [0], [1], [0, 0, 1, 1], [], []>} : vector<2x32xbf16>, vector<32x96xbf16>, vector<2x96xf32> -> vector<2x96xf32>
    %376 = vector.extract_strided_slice %373 {offsets = [0, 0], sizes = [2, 32], strides = [1, 1]} : vector<2x96xf32> to vector<2x32xf32>
    %377 = vector.extract_strided_slice %375 {offsets = [0, 0], sizes = [2, 32], strides = [1, 1]} : vector<2x96xf32> to vector<2x32xf32>
    %378 = arith.addf %376, %377 : vector<2x32xf32>
    %379 = arith.negf %378 : vector<2x32xf32>
    %380 = math.exp %379 : vector<2x32xf32>
    %cst_109 = arith.constant 1.000000e+00 : f32
    %381 = vector.broadcast %cst_109 : f32 to vector<2x32xf32>
    %382 = arith.addf %381, %380 : vector<2x32xf32>
    %383 = arith.divf %381, %382 : vector<2x32xf32>
    %384 = vector.extract_strided_slice %373 {offsets = [0, 32], sizes = [2, 32], strides = [1, 1]} : vector<2x96xf32> to vector<2x32xf32>
    %385 = vector.extract_strided_slice %375 {offsets = [0, 32], sizes = [2, 32], strides = [1, 1]} : vector<2x96xf32> to vector<2x32xf32>
    %386 = arith.addf %384, %385 : vector<2x32xf32>
    %387 = arith.negf %386 : vector<2x32xf32>
    %388 = math.exp %387 : vector<2x32xf32>
    %cst_110 = arith.constant 1.000000e+00 : f32
    %389 = vector.broadcast %cst_110 : f32 to vector<2x32xf32>
    %390 = arith.addf %389, %388 : vector<2x32xf32>
    %391 = arith.divf %389, %390 : vector<2x32xf32>
    %392 = vector.extract_strided_slice %373 {offsets = [0, 64], sizes = [2, 32], strides = [1, 1]} : vector<2x96xf32> to vector<2x32xf32>
    %393 = vector.extract_strided_slice %375 {offsets = [0, 64], sizes = [2, 32], strides = [1, 1]} : vector<2x96xf32> to vector<2x32xf32>
    %394 = arith.addf %393, %278 : vector<2x32xf32>
    %395 = arith.mulf %383, %394 : vector<2x32xf32>
    %396 = arith.addf %392, %395 : vector<2x32xf32>
    %397 = math.tanh %396 : vector<2x32xf32>
    %cst_111 = arith.constant 1.000000e+00 : f32
    %398 = vector.broadcast %cst_111 : f32 to vector<2x32xf32>
    %399 = arith.subf %398, %391 : vector<2x32xf32>
    %400 = arith.mulf %399, %397 : vector<2x32xf32>
    %401 = arith.mulf %391, %371 : vector<2x32xf32>
    %402 = arith.addf %400, %401 : vector<2x32xf32>
    %c6_112 = arith.constant 6 : index
    %c0_113 = arith.constant 0 : index
    %403 = vector.load %arg11[%c6_112, %c0_113] : memref<16x32xf32, #tpu.memory_space<vmem>>, vector<2x32xf32>
    tpu.vector_store %arg11[%c6_112, %c0_113], %402 {strides = array<i32>} : memref<16x32xf32, #tpu.memory_space<vmem>>, vector<2x32xf32>,
    %c8_114 = arith.constant 8 : index
    %c0_115 = arith.constant 0 : index
    %404 = vector.load %arg10[%c8_114, %c0_115] : memref<16x96xf32, #tpu.memory_space<vmem>>, vector<2x96xf32>
    %405 = arith.truncf %402 : vector<2x32xf32> to vector<2x32xbf16>
    %cst_116 = arith.constant dense<0.000000e+00> : vector<2x96xf32>
    %406 = tpu.matmul %405, %275, %cst_116 {dimension_numbers = #tpu.dot_dimension_numbers<[1], [0], [0], [1], [0, 0, 1, 1], [], []>} : vector<2x32xbf16>, vector<32x96xbf16>, vector<2x96xf32> -> vector<2x96xf32>
    %407 = vector.extract_strided_slice %404 {offsets = [0, 0], sizes = [2, 32], strides = [1, 1]} : vector<2x96xf32> to vector<2x32xf32>
    %408 = vector.extract_strided_slice %406 {offsets = [0, 0], sizes = [2, 32], strides = [1, 1]} : vector<2x96xf32> to vector<2x32xf32>
    %409 = arith.addf %407, %408 : vector<2x32xf32>
    %410 = arith.negf %409 : vector<2x32xf32>
    %411 = math.exp %410 : vector<2x32xf32>
    %cst_117 = arith.constant 1.000000e+00 : f32
    %412 = vector.broadcast %cst_117 : f32 to vector<2x32xf32>
    %413 = arith.addf %412, %411 : vector<2x32xf32>
    %414 = arith.divf %412, %413 : vector<2x32xf32>
    %415 = vector.extract_strided_slice %404 {offsets = [0, 32], sizes = [2, 32], strides = [1, 1]} : vector<2x96xf32> to vector<2x32xf32>
    %416 = vector.extract_strided_slice %406 {offsets = [0, 32], sizes = [2, 32], strides = [1, 1]} : vector<2x96xf32> to vector<2x32xf32>
    %417 = arith.addf %415, %416 : vector<2x32xf32>
    %418 = arith.negf %417 : vector<2x32xf32>
    %419 = math.exp %418 : vector<2x32xf32>
    %cst_118 = arith.constant 1.000000e+00 : f32
    %420 = vector.broadcast %cst_118 : f32 to vector<2x32xf32>
    %421 = arith.addf %420, %419 : vector<2x32xf32>
    %422 = arith.divf %420, %421 : vector<2x32xf32>
    %423 = vector.extract_strided_slice %404 {offsets = [0, 64], sizes = [2, 32], strides = [1, 1]} : vector<2x96xf32> to vector<2x32xf32>
    %424 = vector.extract_strided_slice %406 {offsets = [0, 64], sizes = [2, 32], strides = [1, 1]} : vector<2x96xf32> to vector<2x32xf32>
    %425 = arith.addf %424, %278 : vector<2x32xf32>
    %426 = arith.mulf %414, %425 : vector<2x32xf32>
    %427 = arith.addf %423, %426 : vector<2x32xf32>
    %428 = math.tanh %427 : vector<2x32xf32>
    %cst_119 = arith.constant 1.000000e+00 : f32
    %429 = vector.broadcast %cst_119 : f32 to vector<2x32xf32>
    %430 = arith.subf %429, %422 : vector<2x32xf32>
    %431 = arith.mulf %430, %428 : vector<2x32xf32>
    %432 = arith.mulf %422, %402 : vector<2x32xf32>
    %433 = arith.addf %431, %432 : vector<2x32xf32>
    %c8_120 = arith.constant 8 : index
    %c0_121 = arith.constant 0 : index
    %434 = vector.load %arg11[%c8_120, %c0_121] : memref<16x32xf32, #tpu.memory_space<vmem>>, vector<2x32xf32>
    tpu.vector_store %arg11[%c8_120, %c0_121], %433 {strides = array<i32>} : memref<16x32xf32, #tpu.memory_space<vmem>>, vector<2x32xf32>,
    %c10_122 = arith.constant 10 : index
    %c0_123 = arith.constant 0 : index
    %435 = vector.load %arg10[%c10_122, %c0_123] : memref<16x96xf32, #tpu.memory_space<vmem>>, vector<2x96xf32>
    %436 = arith.truncf %433 : vector<2x32xf32> to vector<2x32xbf16>
    %cst_124 = arith.constant dense<0.000000e+00> : vector<2x96xf32>
    %437 = tpu.matmul %436, %275, %cst_124 {dimension_numbers = #tpu.dot_dimension_numbers<[1], [0], [0], [1], [0, 0, 1, 1], [], []>} : vector<2x32xbf16>, vector<32x96xbf16>, vector<2x96xf32> -> vector<2x96xf32>
    %438 = vector.extract_strided_slice %435 {offsets = [0, 0], sizes = [2, 32], strides = [1, 1]} : vector<2x96xf32> to vector<2x32xf32>
    %439 = vector.extract_strided_slice %437 {offsets = [0, 0], sizes = [2, 32], strides = [1, 1]} : vector<2x96xf32> to vector<2x32xf32>
    %440 = arith.addf %438, %439 : vector<2x32xf32>
    %441 = arith.negf %440 : vector<2x32xf32>
    %442 = math.exp %441 : vector<2x32xf32>
    %cst_125 = arith.constant 1.000000e+00 : f32
    %443 = vector.broadcast %cst_125 : f32 to vector<2x32xf32>
    %444 = arith.addf %443, %442 : vector<2x32xf32>
    %445 = arith.divf %443, %444 : vector<2x32xf32>
    %446 = vector.extract_strided_slice %435 {offsets = [0, 32], sizes = [2, 32], strides = [1, 1]} : vector<2x96xf32> to vector<2x32xf32>
    %447 = vector.extract_strided_slice %437 {offsets = [0, 32], sizes = [2, 32], strides = [1, 1]} : vector<2x96xf32> to vector<2x32xf32>
    %448 = arith.addf %446, %447 : vector<2x32xf32>
    %449 = arith.negf %448 : vector<2x32xf32>
    %450 = math.exp %449 : vector<2x32xf32>
    %cst_126 = arith.constant 1.000000e+00 : f32
    %451 = vector.broadcast %cst_126 : f32 to vector<2x32xf32>
    %452 = arith.addf %451, %450 : vector<2x32xf32>
    %453 = arith.divf %451, %452 : vector<2x32xf32>
    %454 = vector.extract_strided_slice %435 {offsets = [0, 64], sizes = [2, 32], strides = [1, 1]} : vector<2x96xf32> to vector<2x32xf32>
    %455 = vector.extract_strided_slice %437 {offsets = [0, 64], sizes = [2, 32], strides = [1, 1]} : vector<2x96xf32> to vector<2x32xf32>
    %456 = arith.addf %455, %278 : vector<2x32xf32>
    %457 = arith.mulf %445, %456 : vector<2x32xf32>
    %458 = arith.addf %454, %457 : vector<2x32xf32>
    %459 = math.tanh %458 : vector<2x32xf32>
    %cst_127 = arith.constant 1.000000e+00 : f32
    %460 = vector.broadcast %cst_127 : f32 to vector<2x32xf32>
    %461 = arith.subf %460, %453 : vector<2x32xf32>
    %462 = arith.mulf %461, %459 : vector<2x32xf32>
    %463 = arith.mulf %453, %433 : vector<2x32xf32>
    %464 = arith.addf %462, %463 : vector<2x32xf32>
    %c10_128 = arith.constant 10 : index
    %c0_129 = arith.constant 0 : index
    %465 = vector.load %arg11[%c10_128, %c0_129] : memref<16x32xf32, #tpu.memory_space<vmem>>, vector<2x32xf32>
    tpu.vector_store %arg11[%c10_128, %c0_129], %464 {strides = array<i32>} : memref<16x32xf32, #tpu.memory_space<vmem>>, vector<2x32xf32>,
    %c12_130 = arith.constant 12 : index
    %c0_131 = arith.constant 0 : index
    %466 = vector.load %arg10[%c12_130, %c0_131] : memref<16x96xf32, #tpu.memory_space<vmem>>, vector<2x96xf32>
    %467 = arith.truncf %464 : vector<2x32xf32> to vector<2x32xbf16>
    %cst_132 = arith.constant dense<0.000000e+00> : vector<2x96xf32>
    %468 = tpu.matmul %467, %275, %cst_132 {dimension_numbers = #tpu.dot_dimension_numbers<[1], [0], [0], [1], [0, 0, 1, 1], [], []>} : vector<2x32xbf16>, vector<32x96xbf16>, vector<2x96xf32> -> vector<2x96xf32>
    %469 = vector.extract_strided_slice %466 {offsets = [0, 0], sizes = [2, 32], strides = [1, 1]} : vector<2x96xf32> to vector<2x32xf32>
    %470 = vector.extract_strided_slice %468 {offsets = [0, 0], sizes = [2, 32], strides = [1, 1]} : vector<2x96xf32> to vector<2x32xf32>
    %471 = arith.addf %469, %470 : vector<2x32xf32>
    %472 = arith.negf %471 : vector<2x32xf32>
    %473 = math.exp %472 : vector<2x32xf32>
    %cst_133 = arith.constant 1.000000e+00 : f32
    %474 = vector.broadcast %cst_133 : f32 to vector<2x32xf32>
    %475 = arith.addf %474, %473 : vector<2x32xf32>
    %476 = arith.divf %474, %475 : vector<2x32xf32>
    %477 = vector.extract_strided_slice %466 {offsets = [0, 32], sizes = [2, 32], strides = [1, 1]} : vector<2x96xf32> to vector<2x32xf32>
    %478 = vector.extract_strided_slice %468 {offsets = [0, 32], sizes = [2, 32], strides = [1, 1]} : vector<2x96xf32> to vector<2x32xf32>
    %479 = arith.addf %477, %478 : vector<2x32xf32>
    %480 = arith.negf %479 : vector<2x32xf32>
    %481 = math.exp %480 : vector<2x32xf32>
    %cst_134 = arith.constant 1.000000e+00 : f32
    %482 = vector.broadcast %cst_134 : f32 to vector<2x32xf32>
    %483 = arith.addf %482, %481 : vector<2x32xf32>
    %484 = arith.divf %482, %483 : vector<2x32xf32>
    %485 = vector.extract_strided_slice %466 {offsets = [0, 64], sizes = [2, 32], strides = [1, 1]} : vector<2x96xf32> to vector<2x32xf32>
    %486 = vector.extract_strided_slice %468 {offsets = [0, 64], sizes = [2, 32], strides = [1, 1]} : vector<2x96xf32> to vector<2x32xf32>
    %487 = arith.addf %486, %278 : vector<2x32xf32>
    %488 = arith.mulf %476, %487 : vector<2x32xf32>
    %489 = arith.addf %485, %488 : vector<2x32xf32>
    %490 = math.tanh %489 : vector<2x32xf32>
    %cst_135 = arith.constant 1.000000e+00 : f32
    %491 = vector.broadcast %cst_135 : f32 to vector<2x32xf32>
    %492 = arith.subf %491, %484 : vector<2x32xf32>
    %493 = arith.mulf %492, %490 : vector<2x32xf32>
    %494 = arith.mulf %484, %464 : vector<2x32xf32>
    %495 = arith.addf %493, %494 : vector<2x32xf32>
    %c12_136 = arith.constant 12 : index
    %c0_137 = arith.constant 0 : index
    %496 = vector.load %arg11[%c12_136, %c0_137] : memref<16x32xf32, #tpu.memory_space<vmem>>, vector<2x32xf32>
    tpu.vector_store %arg11[%c12_136, %c0_137], %495 {strides = array<i32>} : memref<16x32xf32, #tpu.memory_space<vmem>>, vector<2x32xf32>,
    %c14_138 = arith.constant 14 : index
    %c0_139 = arith.constant 0 : index
    %497 = vector.load %arg10[%c14_138, %c0_139] : memref<16x96xf32, #tpu.memory_space<vmem>>, vector<2x96xf32>
    %498 = arith.truncf %495 : vector<2x32xf32> to vector<2x32xbf16>
    %cst_140 = arith.constant dense<0.000000e+00> : vector<2x96xf32>
    %499 = tpu.matmul %498, %275, %cst_140 {dimension_numbers = #tpu.dot_dimension_numbers<[1], [0], [0], [1], [0, 0, 1, 1], [], []>} : vector<2x32xbf16>, vector<32x96xbf16>, vector<2x96xf32> -> vector<2x96xf32>
    %500 = vector.extract_strided_slice %497 {offsets = [0, 0], sizes = [2, 32], strides = [1, 1]} : vector<2x96xf32> to vector<2x32xf32>
    %501 = vector.extract_strided_slice %499 {offsets = [0, 0], sizes = [2, 32], strides = [1, 1]} : vector<2x96xf32> to vector<2x32xf32>
    %502 = arith.addf %500, %501 : vector<2x32xf32>
    %503 = arith.negf %502 : vector<2x32xf32>
    %504 = math.exp %503 : vector<2x32xf32>
    %cst_141 = arith.constant 1.000000e+00 : f32
    %505 = vector.broadcast %cst_141 : f32 to vector<2x32xf32>
    %506 = arith.addf %505, %504 : vector<2x32xf32>
    %507 = arith.divf %505, %506 : vector<2x32xf32>
    %508 = vector.extract_strided_slice %497 {offsets = [0, 32], sizes = [2, 32], strides = [1, 1]} : vector<2x96xf32> to vector<2x32xf32>
    %509 = vector.extract_strided_slice %499 {offsets = [0, 32], sizes = [2, 32], strides = [1, 1]} : vector<2x96xf32> to vector<2x32xf32>
    %510 = arith.addf %508, %509 : vector<2x32xf32>
    %511 = arith.negf %510 : vector<2x32xf32>
    %512 = math.exp %511 : vector<2x32xf32>
    %cst_142 = arith.constant 1.000000e+00 : f32
    %513 = vector.broadcast %cst_142 : f32 to vector<2x32xf32>
    %514 = arith.addf %513, %512 : vector<2x32xf32>
    %515 = arith.divf %513, %514 : vector<2x32xf32>
    %516 = vector.extract_strided_slice %497 {offsets = [0, 64], sizes = [2, 32], strides = [1, 1]} : vector<2x96xf32> to vector<2x32xf32>
    %517 = vector.extract_strided_slice %499 {offsets = [0, 64], sizes = [2, 32], strides = [1, 1]} : vector<2x96xf32> to vector<2x32xf32>
    %518 = arith.addf %517, %278 : vector<2x32xf32>
    %519 = arith.mulf %507, %518 : vector<2x32xf32>
    %520 = arith.addf %516, %519 : vector<2x32xf32>
    %521 = math.tanh %520 : vector<2x32xf32>
    %cst_143 = arith.constant 1.000000e+00 : f32
    %522 = vector.broadcast %cst_143 : f32 to vector<2x32xf32>
    %523 = arith.subf %522, %515 : vector<2x32xf32>
    %524 = arith.mulf %523, %521 : vector<2x32xf32>
    %525 = arith.mulf %515, %495 : vector<2x32xf32>
    %526 = arith.addf %524, %525 : vector<2x32xf32>
    %c14_144 = arith.constant 14 : index
    %c0_145 = arith.constant 0 : index
    %527 = vector.load %arg11[%c14_144, %c0_145] : memref<16x32xf32, #tpu.memory_space<vmem>>, vector<2x32xf32>
    tpu.vector_store %arg11[%c14_144, %c0_145], %526 {strides = array<i32>} : memref<16x32xf32, #tpu.memory_space<vmem>>, vector<2x32xf32>,
    %c0_146 = arith.constant 0 : index
    %c0_147 = arith.constant 0 : index
    %528 = vector.load %arg11[%c0_146, %c0_147] : memref<16x32xf32, #tpu.memory_space<vmem>>, vector<2x32xf32>
    %c2_148 = arith.constant 2 : index
    %c0_149 = arith.constant 0 : index
    %529 = vector.load %arg11[%c2_148, %c0_149] : memref<16x32xf32, #tpu.memory_space<vmem>>, vector<2x32xf32>
    %c4_150 = arith.constant 4 : index
    %c0_151 = arith.constant 0 : index
    %530 = vector.load %arg11[%c4_150, %c0_151] : memref<16x32xf32, #tpu.memory_space<vmem>>, vector<2x32xf32>
    %c6_152 = arith.constant 6 : index
    %c0_153 = arith.constant 0 : index
    %531 = vector.load %arg11[%c6_152, %c0_153] : memref<16x32xf32, #tpu.memory_space<vmem>>, vector<2x32xf32>
    %c8_154 = arith.constant 8 : index
    %c0_155 = arith.constant 0 : index
    %532 = vector.load %arg11[%c8_154, %c0_155] : memref<16x32xf32, #tpu.memory_space<vmem>>, vector<2x32xf32>
    %c10_156 = arith.constant 10 : index
    %c0_157 = arith.constant 0 : index
    %533 = vector.load %arg11[%c10_156, %c0_157] : memref<16x32xf32, #tpu.memory_space<vmem>>, vector<2x32xf32>
    %c12_158 = arith.constant 12 : index
    %c0_159 = arith.constant 0 : index
    %534 = vector.load %arg11[%c12_158, %c0_159] : memref<16x32xf32, #tpu.memory_space<vmem>>, vector<2x32xf32>
    %c14_160 = arith.constant 14 : index
    %c0_161 = arith.constant 0 : index
    %535 = vector.load %arg11[%c14_160, %c0_161] : memref<16x32xf32, #tpu.memory_space<vmem>>, vector<2x32xf32>
    %536 = tpu.concatenate %528, %529, %530, %531, %532, %533, %534, %535 in 1 : vector<2x32xf32>, vector<2x32xf32>, vector<2x32xf32>, vector<2x32xf32>, vector<2x32xf32>, vector<2x32xf32>, vector<2x32xf32>, vector<2x32xf32> -> vector<2x256xf32>
    %c0_162 = arith.constant 0 : index
    %c0_163 = arith.constant 0 : index
    %537 = vector.load %arg9[%c0_162, %c0_163] : memref<2x256xf32, #tpu.memory_space<vmem>>, vector<2x256xf32>
    tpu.vector_store %arg9[%c0_162, %c0_163], %536 {strides = array<i32>} : memref<2x256xf32, #tpu.memory_space<vmem>>, vector<2x256xf32>,
    return
  }
}

</mosaic_0001>

<bundles_post_ra>
// kernel: gru_forward.1
= control target key start
LH: loop header
LB: loop body
LE: loop exit
PB: predicated region body
PF: predicated region fallthrough
CT: control target
= control target key end

     0   :  { %14 = vsyncpa [#allocation5], 0  ;;  %s2546_s0 = inlined_call_operand.vmem [shape: f32[16,1], index: 0, kind: input, shape index: {}]   ;;  %s2547_s1 = inlined_call_operand.hbm [shape: f32[1,96], index: 1, kind: input, shape index: {}]   ;;  %s2548_s2 = inlined_call_operand.hbm [shape: f32[1,96], index: 2, kind: input, shape index: {}]   ;;  %s2549_s3 = inlined_call_operand.vmem [shape: f32[32,96], index: 3, kind: input, shape index: {}]   ;;  %s2550_s4 = inlined_call_operand.hbm [shape: f32[1,32], index: 4, kind: input, shape index: {}]   ;;  %s2551_s5 = inlined_call_operand.vmem [shape: f32[32,96], index: 5, kind: input, shape index: {}]   ;;  %s2552_s6 = inlined_call_operand.hbm [shape: f32[1,96], index: 6, kind: input, shape index: {}]   ;;  %s2553_s7 = inlined_call_operand.hbm [shape: f32[32,96], index: 7, kind: input, shape index: {}]   ;;  %s2554_s8 = inlined_call_operand.hbm [shape: f32[1,32], index: 8, kind: input, shape index: {}]   ;;  %s2555_s9 = inlined_call_operand.vmem [shape: f32[2,256], index: 9, kind: output, shape index: {}]  }
   0x1   :  { %15 = vsyncpa [#allocation7], 0 }
   0x2   :  { %16 = vsyncpa [#allocation10], 0 }
   0x3   :  { %17 = vsyncpa [#allocation13], 0  ;;  %s2036_s30 = smov [#allocation6]   ;;  %s2037_s11 = smov [#allocation9]  }
   0x4   :  { %s36_s10 = sshll.u32 %s2036_s30, 4  ;;  %s60_s12 = sshll.u32 %s2037_s11, 4  ;;  %s37_s10 = int_to_ptr.vmem [resolvable:$true] %s36_s10  ;;  %s61_s12 = int_to_ptr.vmem [resolvable:$true] %s60_s12 }
   0x5   :  { %s1896_s15 = scalar_lea.hbm %s2548_s2, 16 }
   0x6   :  { %p1897_p0 = scmp.ne.s32.totalorder %s2548_s2, %s1896_s15  ;;  %p1900_p1 = scmp.lt.u32.totalorder %s1896_s15, %s2548_s2 }
   0x8   :  { %p1902_p2 = pnand %p1900_p1, %p1897_p0 }
   0xa   :  { %1905 = shalt.err (!%p1902_p2)
}
   0xb   :  { %s1906_s20 = scalar_lea.vmem %s37_s10, 16  ;;  %s1910_s21 = scalar_lea.vmem %s37_s10, 32 }
   0xc   :  { %p1907_p3 = scmp.ne.s32.totalorder %s37_s10, %s1906_s20  ;;  %p1911_p4 = scmp.lt.s32.totalorder %s37_s10, %s37_s10 }
   0xd   :  { %p1912_p5 = scmp.lt.s32.totalorder %s1910_s21, %s1906_s20 }
   0xf   :  { %p1913_p6 = por %p1912_p5, %p1911_p4 }
  0x11   :  { %p1914_p7 = pnand %p1913_p6, %p1907_p3 }
  0x13   :  { %1917 = shalt.err (!%p1914_p7)
}
  0x14   :  { %39 = dma.hbm_to_vmem [thread:$0]  %s2548_s2, 16, %s37_s10, [#allocation7]  }
  0x15   :  { %s1918_s26 = scalar_lea.hbm %s2552_s6, 16 }
  0x16   :  { %p1919_p8 = scmp.ne.s32.totalorder %s2552_s6, %s1918_s26  ;;  %p1922_p9 = scmp.lt.u32.totalorder %s1918_s26, %s2552_s6 }
  0x18   :  { %p1924_p10 = pnand %p1922_p9, %p1919_p8 }
  0x1a   :  { %1927 = shalt.err (!%p1924_p10)
}
  0x1b   :  { %s1928_s11 = scalar_lea.vmem %s61_s12, 16  ;;  %s1932_s13 = scalar_lea.vmem %s61_s12, 32 }
  0x1c   :  { %p1929_p11 = scmp.ne.s32.totalorder %s61_s12, %s1928_s11  ;;  %p1933_p12 = scmp.lt.s32.totalorder %s61_s12, %s61_s12 }
  0x1d   :  { %p1934_p13 = scmp.lt.s32.totalorder %s1932_s13, %s1928_s11 }
  0x1f   :  { %p1935_p0 = por %p1934_p13, %p1933_p12 }
  0x21   :  { %p1936_p1 = pnand %p1935_p0, %p1929_p11 }
  0x23   :  { %1939 = shalt.err (!%p1936_p1)
}
  0x24   :  { %63 = dma.hbm_to_vmem [thread:$0]  %s2552_s6, 16, %s61_s12, [#allocation10]  }
  0x25   :  { %s2038_s14 = smov [#allocation4]   ;;  %s2039_s16 = smov [#allocation8]  }
  0x26   :  { %s26_s15 = sshll.u32 %s2038_s14, 4  ;;  %s48_s17 = sshll.u32 %s2039_s16, 4  ;;  %s27_s15 = int_to_ptr.vmem [resolvable:$true] %s26_s15  ;;  %s49_s17 = int_to_ptr.vmem [resolvable:$true] %s48_s17 }
  0x27   :  { %s1940_s20 = scalar_lea.hbm %s2547_s1, 16 }
  0x28   :  { %p1941_p2 = scmp.ne.s32.totalorder %s2547_s1, %s1940_s20  ;;  %p1944_p3 = scmp.lt.u32.totalorder %s1940_s20, %s2547_s1 }
  0x2a   :  { %p1946_p4 = pnand %p1944_p3, %p1941_p2 }
  0x2c   :  { %1949 = shalt.err (!%p1946_p4)
}
  0x2d   :  { %s1950_s6 = scalar_lea.vmem %s27_s15, 16  ;;  %s1954_s12 = scalar_lea.vmem %s27_s15, 32 }
  0x2e   :  { %p1951_p5 = scmp.ne.s32.totalorder %s27_s15, %s1950_s6  ;;  %p1955_p6 = scmp.lt.s32.totalorder %s27_s15, %s27_s15 }
  0x2f   :  { %p1956_p7 = scmp.lt.s32.totalorder %s1954_s12, %s1950_s6 }
  0x31   :  { %p1957_p8 = por %p1956_p7, %p1955_p6 }
  0x33   :  { %p1958_p9 = pnand %p1957_p8, %p1951_p5 }
  0x35   :  { %1961 = shalt.err (!%p1958_p9)
}
  0x36   :  { %29 = dma.hbm_to_vmem [thread:$0]  %s2547_s1, 16, %s27_s15, [#allocation5]  }
  0x37   :  { %s1962_s29 = scalar_lea.hbm %s2550_s4, 16 }
  0x38   :  { %p1963_p10 = scmp.ne.s32.totalorder %s2550_s4, %s1962_s29  ;;  %p1966_p11 = scmp.lt.u32.totalorder %s1962_s29, %s2550_s4 }
  0x3a   :  { %p1968_p12 = pnand %p1966_p11, %p1963_p10 }
  0x3c   :  { %1971 = shalt.err (!%p1968_p12)
}
  0x3d   :  { %s1972_s10 = scalar_lea.vmem %s49_s17, 16  ;;  %s1976_s14 = scalar_lea.vmem %s49_s17, 32 }
  0x3e   :  { %p1973_p13 = scmp.ne.s32.totalorder %s49_s17, %s1972_s10  ;;  %p1977_p0 = scmp.lt.s32.totalorder %s49_s17, %s49_s17 }
  0x3f   :  { %p1978_p1 = scmp.lt.s32.totalorder %s1976_s14, %s1972_s10 }
  0x41   :  { %p1979_p2 = por %p1978_p1, %p1977_p0 }
  0x43   :  { %p1980_p3 = pnand %p1979_p2, %p1973_p13 }
  0x45   :  { %1983 = shalt.err (!%p1980_p3)
}
  0x46   :  { %51 = dma.hbm_to_vmem [thread:$0]  %s2550_s4, 16, %s49_s17, [#allocation7]  }
  0x47   :  { %s2040_s16 = smov [#allocation11]   ;;  %s1984_s21 = scalar_lea.hbm %s2553_s7, 512 }
  0x48   :  { %s69_s18 = sshll.u32 %s2040_s16, 4  ;;  %p1985_p4 = scmp.ne.s32.totalorder %s2553_s7, %s1984_s21  ;;  %s70_s18 = int_to_ptr.vmem [resolvable:$true] %s69_s18 }
  0x49   :  { %p1988_p5 = scmp.lt.u32.totalorder %s1984_s21, %s2553_s7 }
  0x4b   :  { %p1990_p6 = pnand %p1988_p5, %p1985_p4 }
  0x4d   :  { %1993 = shalt.err (!%p1990_p6)
}
  0x4e   :  { %s1994_s12 = scalar_lea.vmem %s70_s18, 512  ;;  %p1999_p8 = scmp.lt.s32.totalorder %s70_s18, %s70_s18 }
  0x4f   :  { %p1995_p7 = scmp.ne.s32.totalorder %s70_s18, %s1994_s12  ;;  %p2000_p9 = scmp.lt.s32.totalorder %s1994_s12, %s1994_s12 }
  0x51   :  { %p2001_p10 = por %p2000_p9, %p1999_p8 }
  0x53   :  { %p2002_p11 = pnand %p2001_p10, %p1995_p7 }
  0x55   :  { %2005 = shalt.err (!%p2002_p11)
}
  0x56   :  { %s2041_s4 = smov 128   ;;  %s2042_s17 = smov 8  }
  0x57   :  { %75 = dma.hbm_to_vmem [thread:$0]  %s2553_s7, 512, %s70_s18, [#allocation10], %s2041_s4, %s2041_s4, %s2042_s17  }
  0x58   :  { %s2043_s27 = smov [#allocation12]   ;;  %s2006_s11 = scalar_lea.hbm %s2554_s8, 16 }
  0x59   :  { %s82_s28 = sshll.u32 %s2043_s27, 4  ;;  %p2007_p12 = scmp.ne.s32.totalorder %s2554_s8, %s2006_s11  ;;  %s83_s28 = int_to_ptr.vmem [resolvable:$true] %s82_s28 }
  0x5a   :  { %p2010_p13 = scmp.lt.u32.totalorder %s2006_s11, %s2554_s8 }
  0x5c   :  { %p2012_p0 = pnand %p2010_p13, %p2007_p12 }
  0x5e   :  { %2015 = shalt.err (!%p2012_p0)
}
  0x5f   :  { %s2016_s1 = scalar_lea.vmem %s83_s28, 16  ;;  %s2020_s7 = scalar_lea.vmem %s83_s28, 32 }
  0x60   :  { %p2017_p1 = scmp.ne.s32.totalorder %s83_s28, %s2016_s1  ;;  %p2021_p2 = scmp.lt.s32.totalorder %s83_s28, %s83_s28 }
  0x61   :  { %p2022_p3 = scmp.lt.s32.totalorder %s2020_s7, %s2016_s1 }
  0x63   :  { %p2023_p4 = por %p2022_p3, %p2021_p2 }
  0x65   :  { %p2024_p5 = pnand %p2023_p4, %p2017_p1 }
  0x67   :  { %2027 = shalt.err (!%p2024_p5)
}
  0x68   :  { %85 = dma.hbm_to_vmem [thread:$0]  %s2554_s8, 16, %s83_s28, [#allocation13]  }
  0x69   :  { %2028 = dma.done.wait [#allocation5], 16  }
  0x6a   :  { %2029 = vsyncadd [#allocation5], 4294967280 }
  0x6b   :  { %2030 = dma.done.wait [#allocation7], 32  }
  0x6c   :  { %2031 = vsyncadd [#allocation7], 4294967264 }
  0x6d   :  { %2032 = dma.done.wait [#allocation10], 528  }
  0x6e   :  { %2033 = vsyncadd [#allocation10], 4294966768 }
  0x6f   :  { %2034 = dma.done.wait [#allocation13], 16  }
  0x70   :  { %2035 = vsyncadd [#allocation13], 4294967280  ;;  %v2044_v0 = vmov 0.0   ;;  %vm2045_vm0 = vmmov 0   ;;  %v2046_v1 = vmov 0   ;;  %v138_v2 = vld [vmem:[%s2549_s3] sm:$0xff] }
  0x71   :  { %1648 = vmatprep.subr.bf16.mxu0 %v2044_v0  ;;  %1652 = vmatprep.mubr.msk.bf16.mxu0 %vm2045_vm0, %v2044_v0  ;;  %v139_v3 = vld [vmem:[%s2549_s3 + $0x8] sm:$0xff]  ;;  %v140_v4 = vld [vmem:[%s2549_s3 + $0x10] sm:$0xff]  ;;  %v141_v6 = vld [vmem:[%s2549_s3 + $0x18] sm:$0xff]  ;;  %s2047_s6 = smov 64   ;;  %vm135_vm1 = vcmask 785408   ;;  %s2048_s3 = smov 96  }
  0x72   :  { %1798 = vset.pattern.permute.xlu0 %v2046_v1  ;;  %1656 = vmatprep.subr.bf16.mxu1 %v2044_v0  ;;  %v2189_v5 = vpack.c.bf16 %v139_v3, %v138_v2  ;;  %v1562_v7 = vld [vmem:[#allocation8] ss:$0 sm:$0xff]  ;;  %v2196_v8 = vpack.c.bf16 %v141_v6, %v140_v4  ;;  %v2217_v11 = vld [vmem:[#allocation4] ss:$0 sm:$0xff]  ;;  %v2219_v13 = vld [vmem:[#allocation6] ss:$0 sm:$0xff] }
  0x73   :  { %1660 = vmatprep.mubr.msk.bf16.mxu1 %vm2045_vm0, %v2044_v0  ;;  %1799 = vset.pattern.permute.xlu1 %v2046_v1  ;;  %v112_v9 = vld [vmem:[%s2546_s0] sm:$0xff]  ;;  %vm151_vm2 = vcmask 261120   ;;  %vm229_vm3 = vcmask 254976   ;;  %vm1534_vm4 = vcmask 523264  }
  0x74   :  { %202 = vrot.lane.b32.xlu0 %v1562_v7, %s2047_s6  ;;  %1649 = vmatpush3.bf16.msra.mxu0 %v2189_v5 }
  0x75   :  { %1657 = vmatpush3.bf16.msra.mxu1 %v2189_v5  ;;  %1650 = vmatprep.subr.bf16.mxu0 %v2044_v0 }
  0x76   :  { %1658 = vmatprep.subr.bf16.mxu1 %v2044_v0 }
  0x78   :  { %117 = vperm.xlu0 %1798, %v112_v9   ;;  %1651 = vmatpush3.bf16.msra.mxu0 %v2196_v8 }
  0x79   :  { %1659 = vmatpush3.bf16.msra.mxu1 %v2196_v8  ;;  %1664 = vmatprep.subr.bf16.mxu0 %v2044_v0 }
  0x7a   :  { %1672 = vmatprep.subr.bf16.mxu1 %v2044_v0 }
  0x7b   :  { %1653 = vmatmul.mubr.bf16.vlgmr.msra.gmra.mrb[0].mxu0 %v2046_v1 }
  0x7c   :  { %1665 = vmatpush3.bf16.msra.mxu0 %v2189_v5  ;;  %1668 = vmatprep.mubr.msk.bf16.mxu0 %vm2045_vm0, %v2044_v0 }
  0x7d   :  { %1666 = vmatprep.subr.bf16.mxu0 %v2044_v0 }
  0x80   :  { %1667 = vmatpush3.bf16.msra.mxu0 %v2196_v8 }
  0x81   :  { %1680 = vmatprep.subr.bf16.mxu0 %v2044_v0 }
  0xe6   :  { %v2215_v10 = vpop.permute.xlu0 %202 }
  0xf7   :  { %v118_v12 = vpop.permute.xlu0 %117 }
  0xf8   :  { %v131_v14 = vmul.f32 %v2217_v11, %v118_v12 }
  0xfa   :  { %v133_v15 = vadd.f32 %v2219_v13, %v131_v14 }
  0xfc   :  { %136 = vst.msk [vmem:[#allocation2] sm:$0xff] %vm135_vm1, %v133_v15 }
 0x103   :  { %v150_v21 = vld [vmem:[#allocation2] sm:$0x3]  ;;  %v231_v44 = vld [vmem:[#allocation2 + $0x2] sm:$0x3]  ;;  %v311_v6 = vld [vmem:[#allocation2 + $0x4] sm:$0x3] }
 0x14e   :  { %v189_v16 = vpop.f32.mrb[0].mxu0 }
 0x14f   :  { %v1654_v17 = vpop.f32.mrb[1].mxu0  ;;  %v205_v18 = vadd.f32 %v2215_v10, %v189_v16  ;;  %v195_v22 = vadd.f32 %v189_v16, %v150_v21 }
 0x150   :  { %v192_v19 = vpop.f32.mrb[2].mxu0 }
 0x151   :  { %207 = vrot.lane.b32.xlu1 %v205_v18, %s2047_s6  ;;  %v1655_v20 = vpop.f32.mrb[3].mxu0  ;;  %v1563_v23 = vmul.f32 -1.442695, %v195_v22 }
 0x153   :  { %1800 = vpow2.f32 %v1563_v23 }
 0x15d   :  { %v1801_v24 = vpop.eup %1800 }
 0x15e   :  { %v199_v25 = vadd.f32 1.0, %v1801_v24 }
 0x160   :  { %1802 = vrcp.f32 %v199_v25 }
 0x16a   :  { %v1803_v26 = vpop.eup %1802 }
 0x16b   :  { %v217_v32 = vsub.f32 1.0, %v1803_v26  ;;  %v223_v34 = vmul.f32 0.0, %v1803_v26 }
 0x1c3   :  { %v208_v27 = vpop.permute.xlu1 %207 }
 0x1c4   :  { %v210_v28 = vmul.f32 %v1803_v26, %v208_v27 }
 0x1c6   :  { %212 = vrot.lane.b32.xlu1 %v210_v28, %s2047_s6 }
 0x238   :  { %v213_v29 = vpop.permute.xlu1 %212 }
 0x239   :  { %v215_v30 = vadd.f32 %v213_v29, %v150_v21 }
 0x23b   :  { %1804 = vtanh.f32 %v215_v30 }
 0x245   :  { %v1805_v31 = vpop.eup %1804 }
 0x246   :  { %219 = vrot.lane.b32.xlu1 %v1805_v31, %s2048_s3 }
 0x2b8   :  { %v220_v33 = vpop.permute.xlu1 %219 }
 0x2b9   :  { %v222_v35 = vmul.f32 %v220_v33, %v217_v32  ;;  %v391_v33 = vld [vmem:[#allocation2 + $0x6] sm:$0x3] }
 0x2bb   :  { %v2228_v36 = vadd.f32 %v223_v34, %v222_v35 }
 0x2bd   :  { %v232_v37 = vpack.c.bf16 %v2228_v36, %v2228_v36 }
 0x2bf   :  { %234 = vrot.lane.b32.xlu0 %v232_v37, %s2048_s3 }
 0x331   :  { %v235_v38 = vpop.permute.xlu0 %234 }
 0x332   :  { %1661 = vmatmul.mubr.msk.bf16.vlgmr.msra.gmra.mrb[0].mxu1 %vm151_vm2, %v235_v38 }
 0x333   :  { %1673 = vmatpush3.bf16.msra.mxu1 %v2189_v5  ;;  %1676 = vmatprep.mubr.msk.bf16.mxu1 %vm2045_vm0, %v2044_v0 }
 0x334   :  { %1674 = vmatprep.subr.bf16.mxu1 %v2044_v0 }
 0x337   :  { %1675 = vmatpush3.bf16.msra.mxu1 %v2196_v8 }
 0x338   :  { %1688 = vmatprep.subr.bf16.mxu1 %v2044_v0 }
 0x405   :  { %v273_v39 = vpop.f32.mrb[0].mxu1 }
 0x406   :  { %v286_v40 = vadd.f32 %v273_v39, %v2215_v10  ;;  %v1662_v41 = vpop.f32.mrb[1].mxu1  ;;  %v279_v45 = vadd.f32 %v273_v39, %v231_v44 }
 0x407   :  { %v276_v42 = vpop.f32.mrb[2].mxu1 }
 0x408   :  { %288 = vrot.lane.b32.xlu1 %v286_v40, %s2047_s6  ;;  %v1663_v43 = vpop.f32.mrb[3].mxu1  ;;  %v1565_v46 = vmul.f32 -1.442695, %v279_v45  ;;  %v113_v45 = vld [vmem:[%s2546_s0 + $0x8] sm:$0xff] }
 0x40a   :  { %1806 = vpow2.f32 %v1565_v46 }
 0x414   :  { %v1807_v47 = vpop.eup %1806 }
 0x415   :  { %v283_v48 = vadd.f32 1.0, %v1807_v47 }
 0x417   :  { %1808 = vrcp.f32 %v283_v48 }
 0x421   :  { %v1809_v49 = vpop.eup %1808 }
 0x422   :  { %v298_v55 = vsub.f32 1.0, %v1809_v49  ;;  %v304_v57 = vmul.f32 %v1809_v49, %v2228_v36 }
 0x47a   :  { %v289_v50 = vpop.permute.xlu1 %288 }
 0x47b   :  { %v291_v51 = vmul.f32 %v1809_v49, %v289_v50 }
 0x47d   :  { %293 = vrot.lane.b32.xlu0 %v291_v51, %s2047_s6 }
 0x4ef   :  { %v294_v52 = vpop.permute.xlu0 %293 }
 0x4f0   :  { %v296_v53 = vadd.f32 %v294_v52, %v231_v44 }
 0x4f2   :  { %1810 = vtanh.f32 %v296_v53 }
 0x4fc   :  { %v1811_v54 = vpop.eup %1810 }
 0x4fd   :  { %300 = vrot.lane.b32.xlu1 %v1811_v54, %s2048_s3 }
 0x56f   :  { %v301_v56 = vpop.permute.xlu1 %300 }
 0x570   :  { %v303_v58 = vmul.f32 %v301_v56, %v298_v55 }
 0x572   :  { %v2245_v59 = vadd.f32 %v304_v57, %v303_v58 }
 0x574   :  { %v312_v60 = vpack.c.bf16 %v2245_v59, %v2245_v59 }
 0x576   :  { %314 = vrot.lane.b32.xlu0 %v312_v60, %s2048_s3 }
 0x5e8   :  { %v315_v61 = vpop.permute.xlu0 %314 }
 0x5e9   :  { %1669 = vmatmul.mubr.msk.bf16.vlgmr.msra.gmra.mrb[4].mxu0 %vm151_vm2, %v315_v61 }
 0x5ea   :  { %1681 = vmatpush3.bf16.msra.mxu0 %v2189_v5  ;;  %1684 = vmatprep.mubr.msk.bf16.mxu0 %vm2045_vm0, %v2044_v0 }
 0x5eb   :  { %1682 = vmatprep.subr.bf16.mxu0 %v2044_v0 }
 0x5ee   :  { %1683 = vmatpush3.bf16.msra.mxu0 %v2196_v8 }
 0x5ef   :  { %1696 = vmatprep.subr.bf16.mxu0 %v2044_v0 }
 0x6bc   :  { %v353_v62 = vpop.f32.mrb[4].mxu0 }
 0x6bd   :  { %v366_v63 = vadd.f32 %v353_v62, %v2215_v10  ;;  %v1670_v2 = vpop.f32.mrb[5].mxu0  ;;  %v359_v7 = vadd.f32 %v353_v62, %v311_v6 }
 0x6be   :  { %v356_v3 = vpop.f32.mrb[6].mxu0 }
 0x6bf   :  { %368 = vrot.lane.b32.xlu1 %v366_v63, %s2047_s6  ;;  %v1671_v4 = vpop.f32.mrb[7].mxu0  ;;  %v1567_v9 = vmul.f32 -1.442695, %v359_v7 }
 0x6c1   :  { %1812 = vpow2.f32 %v1567_v9 }
 0x6cb   :  { %v1813_v12 = vpop.eup %1812 }
 0x6cc   :  { %v363_v14 = vadd.f32 1.0, %v1813_v12 }
 0x6ce   :  { %1814 = vrcp.f32 %v363_v14 }
 0x6d8   :  { %v1815_v15 = vpop.eup %1814 }
 0x6d9   :  { %v378_v21 = vsub.f32 1.0, %v1815_v15  ;;  %v384_v23 = vmul.f32 %v1815_v15, %v2245_v59 }
 0x731   :  { %v369_v16 = vpop.permute.xlu1 %368 }
 0x732   :  { %v371_v17 = vmul.f32 %v1815_v15, %v369_v16 }
 0x734   :  { %373 = vrot.lane.b32.xlu0 %v371_v17, %s2047_s6 }
 0x7a6   :  { %v374_v18 = vpop.permute.xlu0 %373 }
 0x7a7   :  { %v376_v19 = vadd.f32 %v374_v18, %v311_v6 }
 0x7a9   :  { %1816 = vtanh.f32 %v376_v19 }
 0x7b3   :  { %v1817_v20 = vpop.eup %1816 }
 0x7b4   :  { %380 = vrot.lane.b32.xlu1 %v1817_v20, %s2048_s3 }
 0x826   :  { %v381_v22 = vpop.permute.xlu1 %380 }
 0x827   :  { %v383_v24 = vmul.f32 %v381_v22, %v378_v21 }
 0x829   :  { %v2262_v25 = vadd.f32 %v384_v23, %v383_v24 }
 0x82b   :  { %v392_v26 = vpack.c.bf16 %v2262_v25, %v2262_v25 }
 0x82d   :  { %394 = vrot.lane.b32.xlu0 %v392_v26, %s2048_s3 }
 0x89f   :  { %v395_v27 = vpop.permute.xlu0 %394 }
 0x8a0   :  { %1677 = vmatmul.mubr.msk.bf16.vlgmr.msra.gmra.mrb[4].mxu1 %vm151_vm2, %v395_v27 }
 0x8a1   :  { %1689 = vmatpush3.bf16.msra.mxu1 %v2189_v5  ;;  %1692 = vmatprep.mubr.msk.bf16.mxu1 %vm2045_vm0, %v2044_v0 }
 0x8a2   :  { %1690 = vmatprep.subr.bf16.mxu1 %v2044_v0 }
 0x8a5   :  { %1691 = vmatpush3.bf16.msra.mxu1 %v2196_v8 }
 0x8a6   :  { %1704 = vmatprep.subr.bf16.mxu1 %v2044_v0 }
 0x973   :  { %v433_v28 = vpop.f32.mrb[4].mxu1 }
 0x974   :  { %v446_v29 = vadd.f32 %v433_v28, %v2215_v10  ;;  %v1678_v30 = vpop.f32.mrb[5].mxu1  ;;  %v439_v34 = vadd.f32 %v433_v28, %v391_v33 }
 0x975   :  { %v436_v31 = vpop.f32.mrb[6].mxu1 }
 0x976   :  { %448 = vrot.lane.b32.xlu1 %v446_v29, %s2047_s6  ;;  %v1679_v32 = vpop.f32.mrb[7].mxu1  ;;  %v1569_v35 = vmul.f32 -1.442695, %v439_v34 }
 0x978   :  { %1818 = vpow2.f32 %v1569_v35 }
 0x982   :  { %v1819_v37 = vpop.eup %1818 }
 0x983   :  { %v443_v38 = vadd.f32 1.0, %v1819_v37 }
 0x985   :  { %1820 = vrcp.f32 %v443_v38 }
 0x98f   :  { %v1821_v39 = vpop.eup %1820 }
 0x990   :  { %v458_v46 = vsub.f32 1.0, %v1821_v39  ;;  %v464_v48 = vmul.f32 %v1821_v39, %v2262_v25 }
 0x9e8   :  { %v449_v40 = vpop.permute.xlu1 %448 }
 0x9e9   :  { %v451_v41 = vmul.f32 %v1821_v39, %v449_v40 }
 0x9eb   :  { %453 = vrot.lane.b32.xlu0 %v451_v41, %s2047_s6 }
 0xa5d   :  { %v454_v42 = vpop.permute.xlu0 %453 }
 0xa5e   :  { %v456_v43 = vadd.f32 %v454_v42, %v391_v33 }
 0xa60   :  { %1822 = vtanh.f32 %v456_v43 }
 0xa6a   :  { %v1823_v44 = vpop.eup %1822 }
 0xa6b   :  { %460 = vrot.lane.b32.xlu1 %v1823_v44, %s2048_s3 }
 0xa6f   :  { %122 = vperm.xlu1 %1799, %v113_v45  }
 0xadd   :  { %v461_v47 = vpop.permute.xlu1 %460 }
 0xade   :  { %v463_v49 = vmul.f32 %v461_v47, %v458_v46 }
 0xae0   :  { %v2282_v50 = vadd.f32 %v464_v48, %v463_v49 }
 0xae2   :  { %v472_v51 = vpack.c.bf16 %v2282_v50, %v2282_v50 }
 0xae4   :  { %474 = vrot.lane.b32.xlu0 %v472_v51, %s2048_s3 }
 0xaee   :  { %v123_v53 = vpop.permute.xlu1 %122 }
 0xaef   :  { %v132_v54 = vmul.f32 %v2217_v11, %v123_v53 }
 0xaf1   :  { %v134_v55 = vadd.f32 %v2219_v13, %v132_v54 }
 0xaf3   :  { %137 = vst.msk [vmem:[#allocation2 + $0x8] sm:$0xff] %vm135_vm1, %v134_v55 }
 0xafa   :  { %v471_v61 = vld [vmem:[#allocation2 + $0x8] sm:$0x3]  ;;  %v551_v27 = vld [vmem:[#allocation2 + $0xa] sm:$0x3]  ;;  %v631_v49 = vld [vmem:[#allocation2 + $0xc] sm:$0x3] }
 0xb56   :  { %v475_v52 = vpop.permute.xlu0 %474 }
 0xb57   :  { %1685 = vmatmul.mubr.msk.bf16.vlgmr.msra.gmra.mrb[8].mxu0 %vm151_vm2, %v475_v52 }
 0xb58   :  { %1697 = vmatpush3.bf16.msra.mxu0 %v2189_v5  ;;  %1700 = vmatprep.mubr.msk.bf16.mxu0 %vm2045_vm0, %v2044_v0 }
 0xb59   :  { %1698 = vmatprep.subr.bf16.mxu0 %v2044_v0 }
 0xb5c   :  { %1699 = vmatpush3.bf16.msra.mxu0 %v2196_v8 }
 0xb5d   :  { %1712 = vmatprep.subr.bf16.mxu0 %v2044_v0 }
 0xc2a   :  { %v513_v56 = vpop.f32.mrb[8].mxu0 }
 0xc2b   :  { %v526_v57 = vadd.f32 %v513_v56, %v2215_v10  ;;  %v1686_v58 = vpop.f32.mrb[9].mxu0  ;;  %v519_v62 = vadd.f32 %v513_v56, %v471_v61 }
 0xc2c   :  { %v516_v11 = vpop.f32.mrb[10].mxu0 }
 0xc2d   :  { %528 = vrot.lane.b32.xlu0 %v526_v57, %s2047_s6  ;;  %v1687_v60 = vpop.f32.mrb[11].mxu0  ;;  %v1571_v63 = vmul.f32 -1.442695, %v519_v62 }
 0xc2f   :  { %1824 = vpow2.f32 %v1571_v63 }
 0xc39   :  { %v1825_v2 = vpop.eup %1824 }
 0xc3a   :  { %v523_v13 = vadd.f32 1.0, %v1825_v2 }
 0xc3c   :  { %1826 = vrcp.f32 %v523_v13 }
 0xc46   :  { %v1827_v3 = vpop.eup %1826 }
 0xc47   :  { %v538_v14 = vsub.f32 1.0, %v1827_v3  ;;  %v544_v16 = vmul.f32 %v1827_v3, %v2282_v50 }
 0xc9f   :  { %v529_v4 = vpop.permute.xlu0 %528 }
 0xca0   :  { %v531_v6 = vmul.f32 %v1827_v3, %v529_v4 }
 0xca2   :  { %533 = vrot.lane.b32.xlu1 %v531_v6, %s2047_s6 }
 0xd14   :  { %v534_v7 = vpop.permute.xlu1 %533 }
 0xd15   :  { %v536_v9 = vadd.f32 %v534_v7, %v471_v61 }
 0xd17   :  { %1828 = vtanh.f32 %v536_v9 }
 0xd21   :  { %v1829_v12 = vpop.eup %1828 }
 0xd22   :  { %540 = vrot.lane.b32.xlu0 %v1829_v12, %s2048_s3 }
 0xd94   :  { %v541_v15 = vpop.permute.xlu0 %540 }
 0xd95   :  { %v543_v17 = vmul.f32 %v541_v15, %v538_v14  ;;  %v711_v15 = vld [vmem:[#allocation2 + $0xe] sm:$0x3] }
 0xd97   :  { %v2302_v18 = vadd.f32 %v544_v16, %v543_v17 }
 0xd99   :  { %v552_v19 = vpack.c.bf16 %v2302_v18, %v2302_v18 }
 0xd9b   :  { %554 = vrot.lane.b32.xlu1 %v552_v19, %s2048_s3 }
 0xe0d   :  { %v555_v20 = vpop.permute.xlu1 %554 }
 0xe0e   :  { %1693 = vmatmul.mubr.msk.bf16.vlgmr.msra.gmra.mrb[8].mxu1 %vm151_vm2, %v555_v20 }
 0xe0f   :  { %1705 = vmatpush3.bf16.msra.mxu1 %v2189_v5  ;;  %1708 = vmatprep.mubr.msk.bf16.mxu1 %vm2045_vm0, %v2044_v0 }
 0xe10   :  { %1706 = vmatprep.subr.bf16.mxu1 %v2044_v0 }
 0xe13   :  { %1707 = vmatpush3.bf16.msra.mxu1 %v2196_v8 }
 0xe14   :  { %1720 = vmatprep.subr.bf16.mxu1 %v2044_v0 }
 0xee1   :  { %v593_v21 = vpop.f32.mrb[8].mxu1 }
 0xee2   :  { %v606_v22 = vadd.f32 %v593_v21, %v2215_v10  ;;  %v1694_v23 = vpop.f32.mrb[9].mxu1  ;;  %v599_v28 = vadd.f32 %v593_v21, %v551_v27 }
 0xee3   :  { %v596_v24 = vpop.f32.mrb[10].mxu1 }
 0xee4   :  { %608 = vrot.lane.b32.xlu0 %v606_v22, %s2047_s6  ;;  %v1695_v26 = vpop.f32.mrb[11].mxu1  ;;  %v1573_v5 = vmul.f32 -1.442695, %v599_v28 }
 0xee6   :  { %1830 = vpow2.f32 %v1573_v5  ;;  %v854_v5 = vld [vmem:[#allocation11 + $0x8] sm:$0xff] }
 0xef0   :  { %v1831_v29 = vpop.eup %1830 }
 0xef1   :  { %v603_v30 = vadd.f32 1.0, %v1831_v29 }
 0xef3   :  { %1832 = vrcp.f32 %v603_v30  ;;  %v856_v30 = vld [vmem:[#allocation11 + $0x18] sm:$0xff] }
 0xefd   :  { %v1833_v31 = vpop.eup %1832 }
 0xefe   :  { %v618_v37 = vsub.f32 1.0, %v1833_v31  ;;  %v624_v39 = vmul.f32 %v1833_v31, %v2302_v18 }
 0xf56   :  { %v609_v32 = vpop.permute.xlu0 %608 }
 0xf57   :  { %v611_v8 = vmul.f32 %v1833_v31, %v609_v32 }
 0xf59   :  { %613 = vrot.lane.b32.xlu1 %v611_v8, %s2047_s6 }
 0xfcb   :  { %v614_v33 = vpop.permute.xlu1 %613 }
 0xfcc   :  { %v616_v34 = vadd.f32 %v614_v33, %v551_v27  ;;  %v804_v33 = vld [vmem:[%s2551_s5 + $0x18] sm:$0xff] }
 0xfce   :  { %1834 = vtanh.f32 %v616_v34 }
 0xfd8   :  { %v1835_v35 = vpop.eup %1834 }
 0xfd9   :  { %620 = vrot.lane.b32.xlu0 %v1835_v35, %s2048_s3 }
0x104b   :  { %v621_v38 = vpop.permute.xlu0 %620 }
0x104c   :  { %v623_v40 = vmul.f32 %v621_v38, %v618_v37 }
0x104e   :  { %v2319_v41 = vadd.f32 %v624_v39, %v623_v40  ;;  %v1580_v40 = vld [vmem:[#allocation12] ss:$0 sm:$0xff] }
0x1050   :  { %v632_v42 = vpack.c.bf16 %v2319_v41, %v2319_v41 }
0x1052   :  { %634 = vrot.lane.b32.xlu1 %v632_v42, %s2048_s3 }
0x10c4   :  { %v635_v43 = vpop.permute.xlu1 %634 }
0x10c5   :  { %1701 = vmatmul.mubr.msk.bf16.vlgmr.msra.gmra.mrb[12].mxu0 %vm151_vm2, %v635_v43 }
0x10c6   :  { %1716 = vmatprep.mubr.msk.bf16.mxu0 %vm2045_vm0, %v2044_v0 }
0x1198   :  { %v673_v44 = vpop.f32.mrb[12].mxu0 }
0x1199   :  { %v686_v45 = vadd.f32 %v673_v44, %v2215_v10  ;;  %v1702_v46 = vpop.f32.mrb[13].mxu0  ;;  %v679_v51 = vadd.f32 %v673_v44, %v631_v49 }
0x119a   :  { %v676_v47 = vpop.f32.mrb[14].mxu0 }
0x119b   :  { %688 = vrot.lane.b32.xlu0 %v686_v45, %s2047_s6  ;;  %v1703_v48 = vpop.f32.mrb[15].mxu0  ;;  %v1575_v52 = vmul.f32 -1.442695, %v679_v51 }
0x119d   :  { %1836 = vpow2.f32 %v1575_v52 }
0x11a7   :  { %v1837_v53 = vpop.eup %1836 }
0x11a8   :  { %v683_v54 = vadd.f32 1.0, %v1837_v53 }
0x11aa   :  { %1838 = vrcp.f32 %v683_v54 }
0x11b4   :  { %v1839_v55 = vpop.eup %1838 }
0x11b5   :  { %v698_v61 = vsub.f32 1.0, %v1839_v55  ;;  %v704_v63 = vmul.f32 %v1839_v55, %v2319_v41 }
0x120d   :  { %v689_v56 = vpop.permute.xlu0 %688 }
0x120e   :  { %v691_v57 = vmul.f32 %v1839_v55, %v689_v56  ;;  %v1578_v56 = vld [vmem:[#allocation9] ss:$0 sm:$0xff] }
0x1210   :  { %693 = vrot.lane.b32.xlu1 %v691_v57, %s2047_s6 }
0x1282   :  { %v694_v58 = vpop.permute.xlu1 %693 }
0x1283   :  { %v696_v11 = vadd.f32 %v694_v58, %v631_v49 }
0x1285   :  { %1840 = vtanh.f32 %v696_v11 }
0x128f   :  { %v1841_v60 = vpop.eup %1840 }
0x1290   :  { %700 = vrot.lane.b32.xlu0 %v1841_v60, %s2048_s3 }
0x1302   :  { %v701_v62 = vpop.permute.xlu0 %700 }
0x1303   :  { %v703_v2 = vmul.f32 %v701_v62, %v698_v61 }
0x1305   :  { %v2332_v13 = vadd.f32 %v704_v63, %v703_v2 }
0x1307   :  { %v712_v3 = vpack.c.bf16 %v2332_v13, %v2332_v13 }
0x1309   :  { %714 = vrot.lane.b32.xlu1 %v712_v3, %s2048_s3 }
0x137b   :  { %v715_v4 = vpop.permute.xlu1 %714 }
0x137c   :  { %1709 = vmatmul.mubr.msk.bf16.vlgmr.msra.gmra.mrb[12].mxu1 %vm151_vm2, %v715_v4 }
0x137d   :  { %1724 = vmatprep.mubr.msk.bf16.mxu1 %vm2045_vm0, %v2044_v0 }
0x144f   :  { %v753_v6 = vpop.f32.mrb[12].mxu1 }
0x1450   :  { %v766_v7 = vadd.f32 %v753_v6, %v2215_v10  ;;  %v1710_v9 = vpop.f32.mrb[13].mxu1  ;;  %v759_v16 = vadd.f32 %v753_v6, %v711_v15 }
0x1451   :  { %v756_v12 = vpop.f32.mrb[14].mxu1 }
0x1452   :  { %768 = vrot.lane.b32.xlu0 %v766_v7, %s2047_s6  ;;  %v1711_v14 = vpop.f32.mrb[15].mxu1  ;;  %v1577_v17 = vmul.f32 -1.442695, %v759_v16 }
0x1454   :  { %1842 = vpow2.f32 %v1577_v17 }
0x145e   :  { %v1843_v19 = vpop.eup %1842 }
0x145f   :  { %v763_v20 = vadd.f32 1.0, %v1843_v19 }
0x1461   :  { %1844 = vrcp.f32 %v763_v20 }
0x146b   :  { %v1845_v21 = vpop.eup %1844 }
0x146c   :  { %v778_v35 = vsub.f32 1.0, %v1845_v21  ;;  %v784_v38 = vmul.f32 %v1845_v21, %v2332_v13 }
0x14c4   :  { %v769_v22 = vpop.permute.xlu0 %768 }
0x14c5   :  { %v771_v23 = vmul.f32 %v1845_v21, %v769_v22 }
0x14c7   :  { %773 = vrot.lane.b32.xlu1 %v771_v23, %s2047_s6 }
0x14cb   :  { %226 = vrot.lane.b32.xlu1 %v2228_v36, %s2048_s3 }
0x14cf   :  { %387 = vrot.lane.b32.xlu1 %v2262_v25, %s2048_s3  ;;  %v853_v25 = vld [vmem:[#allocation11] sm:$0xff] }
0x14d0   :  { %v2355_v29 = vpack.c.bf16 %v854_v5, %v853_v25 }
0x14d2   :  { %1721 = vmatpush3.bf16.msra.mxu1 %v2355_v29 }
0x14d3   :  { %547 = vrot.lane.b32.xlu1 %v2302_v18, %s2048_s3  ;;  %v855_v18 = vld [vmem:[#allocation11 + $0x10] sm:$0xff]  ;;  %1722 = vmatprep.subr.bf16.mxu1 %v2044_v0 }
0x14d4   :  { %v2358_v32 = vpack.c.bf16 %v856_v30, %v855_v18 }
0x14d6   :  { %1723 = vmatpush3.bf16.msra.mxu1 %v2358_v32 }
0x14d7   :  { %707 = vrot.lane.b32.xlu1 %v2332_v13, %s2048_s3  ;;  %1736 = vmatprep.subr.bf16.mxu1 %v2044_v0 }
0x14d9   :  { %1725 = vmatmul.mubr.bf16.vlgmr.msra.gmra.mrb[16].mxu1 %v2046_v1  ;;  %v802_v1 = vld [vmem:[%s2551_s5 + $0x8] sm:$0xff] }
0x14da   :  { %1737 = vmatpush3.bf16.msra.mxu1 %v2355_v29  ;;  %1740 = vmatprep.mubr.msk.bf16.mxu1 %vm2045_vm0, %v2044_v0 }
0x14db   :  { %1738 = vmatprep.subr.bf16.mxu1 %v2044_v0  ;;  %913 = vrot.lane.b32.xlu1 %v1580_v40, %s2047_s6 }
0x14de   :  { %1739 = vmatpush3.bf16.msra.mxu1 %v2358_v32 }
0x14df   :  { %1752 = vmatprep.subr.bf16.mxu1 %v2044_v0 }
0x1539   :  { %v774_v10 = vpop.permute.xlu1 %773 }
0x153a   :  { %v776_v24 = vadd.f32 %v774_v10, %v711_v15 }
0x153c   :  { %1846 = vtanh.f32 %v776_v24 }
0x153d   :  { %v227_v26 = vpop.permute.xlu1 %226 }
0x153e   :  { %230 = vst.msk [vmem:[#allocation3] sm:$0x3] %vm229_vm3, %v227_v26 }
0x1541   :  { %v388_v27 = vpop.permute.xlu1 %387 }
0x1542   :  { %390 = vst.msk [vmem:[#allocation3 + $0x4] sm:$0x3] %vm229_vm3, %v388_v27 }
0x1545   :  { %v548_v36 = vpop.permute.xlu1 %547 }
0x1546   :  { %v1847_v28 = vpop.eup %1846  ;;  %550 = vst.msk [vmem:[#allocation3 + $0x8] sm:$0x3] %vm229_vm3, %v548_v36 }
0x1547   :  { %780 = vrot.lane.b32.xlu0 %v1847_v28, %s2048_s3 }
0x1549   :  { %v708_v31 = vpop.permute.xlu1 %707 }
0x154a   :  { %710 = vst.msk [vmem:[#allocation3 + $0xc] sm:$0x3] %vm229_vm3, %v708_v31 }
0x154b   :  { %307 = vrot.lane.b32.xlu0 %v2245_v59, %s2048_s3  ;;  %v801_v59 = vld [vmem:[%s2551_s5] sm:$0xff] }
0x154c   :  { %v805_v8 = vpack.c.bf16 %v802_v1, %v801_v59 }
0x154d   :  { %v2397_v49 = vpop.permute.xlu1 %913 }
0x154e   :  { %1713 = vmatpush3.bf16.msra.mxu0 %v805_v8 }
0x154f   :  { %467 = vrot.lane.b32.xlu0 %v2282_v50, %s2048_s3  ;;  %v803_v50 = vld [vmem:[%s2551_s5 + $0x10] sm:$0xff]  ;;  %1714 = vmatprep.subr.bf16.mxu0 %v2044_v0  ;;  %s2049_s5 = smov 32  }
0x1550   :  { %v806_v34 = vpack.c.bf16 %v804_v33, %v803_v50 }
0x1552   :  { %1715 = vmatpush3.bf16.msra.mxu0 %v806_v34 }
0x1553   :  { %627 = vrot.lane.b32.xlu0 %v2319_v41, %s2048_s3  ;;  %1728 = vmatprep.subr.bf16.mxu0 %v2044_v0 }
0x15ac   :  { %v900_v45 = vpop.f32.mrb[16].mxu1 }
0x15ad   :  { %v1726_v46 = vpop.f32.mrb[17].mxu1  ;;  %v916_v51 = vadd.f32 %v2397_v49, %v900_v45 }
0x15ae   :  { %v903_v47 = vpop.f32.mrb[18].mxu1 }
0x15af   :  { %v1727_v48 = vpop.f32.mrb[19].mxu1 }
0x15b9   :  { %v781_v37 = vpop.permute.xlu0 %780 }
0x15ba   :  { %v783_v39 = vmul.f32 %v781_v37, %v778_v35 }
0x15bc   :  { %v785_v41 = vadd.f32 %v784_v38, %v783_v39 }
0x15bd   :  { %v308_v42 = vpop.permute.xlu0 %307 }
0x15be   :  { %310 = vst.msk [vmem:[#allocation3 + $0x2] sm:$0x3] %vm229_vm3, %v308_v42  ;;  %787 = vrot.lane.b32.xlu0 %v785_v41, %s2048_s3 }
0x15c1   :  { %v468_v43 = vpop.permute.xlu0 %467 }
0x15c2   :  { %470 = vst.msk [vmem:[#allocation3 + $0x6] sm:$0x3] %vm229_vm3, %v468_v43  ;;  %918 = vrot.lane.b32.xlu0 %v916_v51, %s2047_s6 }
0x15c5   :  { %v628_v44 = vpop.permute.xlu0 %627 }
0x15c6   :  { %630 = vst.msk [vmem:[#allocation3 + $0xa] sm:$0x3] %vm229_vm3, %v628_v44 }
0x15c9   :  { %v798_v53 = vld [vmem:[#allocation3] sm:$0xff] }
0x1630   :  { %v788_v52 = vpop.permute.xlu0 %787 }
0x1631   :  { %790 = vst.msk [vmem:[#allocation3 + $0xe] sm:$0x3] %vm229_vm3, %v788_v52 }
0x1634   :  { %v919_v6 = vpop.permute.xlu0 %918 }
0x1638   :  { %v799_v54 = vld [vmem:[#allocation3 + $0x8] sm:$0xff] }
0x1639   :  { %v800_v55 = vpack.c.bf16 %v799_v54, %v798_v53 }
0x163b   :  { %1717 = vmatmul.mubr.msk.bf16.vlgmr.msra.gmra.mrb[16].mxu0 %vm151_vm2, %v800_v55 }
0x163c   :  { %1729 = vmatpush3.bf16.msra.mxu0 %v2355_v29  ;;  %1732 = vmatprep.mubr.msk.bf16.mxu0 %vm2045_vm0, %v2044_v0 }
0x163d   :  { %1730 = vmatprep.subr.bf16.mxu0 %v2044_v0 }
0x1640   :  { %1731 = vmatpush3.bf16.msra.mxu0 %v2358_v32 }
0x1641   :  { %1744 = vmatprep.subr.bf16.mxu0 %v2044_v0 }
0x170e   :  { %v844_v57 = vpop.f32.mrb[16].mxu0 }
0x170f   :  { %v845_v58 = vadd.f32 %v1578_v56, %v844_v57  ;;  %v1718_v11 = vpop.f32.mrb[17].mxu0 }
0x1710   :  { %v847_v60 = vpop.f32.mrb[18].mxu0 }
0x1711   :  { %851 = vst.msk [vmem:[#allocation2] sm:$0xff] %vm135_vm1, %v845_v58  ;;  %v848_v61 = vadd.f32 %v1578_v56, %v847_v60  ;;  %v1719_v62 = vpop.f32.mrb[19].mxu0 }
0x1713   :  { %852 = vst.msk [vmem:[#allocation2 + $0x8] sm:$0xff] %vm135_vm1, %v848_v61 }
0x1718   :  { %v865_v63 = vld [vmem:[#allocation2] sm:$0x3]  ;;  %v941_v28 = vld [vmem:[#allocation2 + $0x2] sm:$0x3]  ;;  %v1021_v47 = vld [vmem:[#allocation2 + $0x4] sm:$0x3] }
0x1719   :  { %v906_v2 = vadd.f32 %v900_v45, %v865_v63 }
0x171b   :  { %v1581_v13 = vmul.f32 -1.442695, %v906_v2 }
0x171d   :  { %1848 = vpow2.f32 %v1581_v13 }
0x1727   :  { %v1849_v3 = vpop.eup %1848 }
0x1728   :  { %v910_v4 = vadd.f32 1.0, %v1849_v3 }
0x172a   :  { %1850 = vrcp.f32 %v910_v4 }
0x1734   :  { %v1851_v7 = vpop.eup %1850 }
0x1735   :  { %v921_v9 = vmul.f32 %v1851_v7, %v919_v6  ;;  %v928_v16 = vsub.f32 1.0, %v1851_v7  ;;  %v934_v19 = vmul.f32 0.0, %v1851_v7 }
0x1737   :  { %923 = vrot.lane.b32.xlu1 %v921_v9, %s2047_s6 }
0x17a9   :  { %v924_v12 = vpop.permute.xlu1 %923 }
0x17aa   :  { %v926_v14 = vadd.f32 %v924_v12, %v865_v63 }
0x17ac   :  { %1852 = vtanh.f32 %v926_v14  ;;  %v1101_v14 = vld [vmem:[#allocation2 + $0x6] sm:$0x3] }
0x17b6   :  { %v1853_v15 = vpop.eup %1852 }
0x17b7   :  { %930 = vrot.lane.b32.xlu0 %v1853_v15, %s2048_s3 }
0x1829   :  { %v931_v17 = vpop.permute.xlu0 %930 }
0x182a   :  { %v933_v20 = vmul.f32 %v931_v17, %v928_v16 }
0x182c   :  { %v2413_v21 = vadd.f32 %v934_v19, %v933_v20 }
0x182e   :  { %v942_v22 = vpack.c.bf16 %v2413_v21, %v2413_v21 }
0x1830   :  { %944 = vrot.lane.b32.xlu1 %v942_v22, %s2048_s3 }
0x18a2   :  { %v945_v23 = vpop.permute.xlu1 %944 }
0x18a3   :  { %1733 = vmatmul.mubr.msk.bf16.vlgmr.msra.gmra.mrb[20].mxu0 %vm151_vm2, %v945_v23 }
0x18a4   :  { %1745 = vmatpush3.bf16.msra.mxu0 %v2355_v29  ;;  %1748 = vmatprep.mubr.msk.bf16.mxu0 %vm2045_vm0, %v2044_v0 }
0x18a5   :  { %1746 = vmatprep.subr.bf16.mxu0 %v2044_v0 }
0x18a8   :  { %1747 = vmatpush3.bf16.msra.mxu0 %v2358_v32 }
0x18a9   :  { %1760 = vmatprep.subr.bf16.mxu0 %v2044_v0 }
0x1976   :  { %v983_v10 = vpop.f32.mrb[20].mxu0 }
0x1977   :  { %v996_v24 = vadd.f32 %v983_v10, %v2397_v49  ;;  %v1734_v26 = vpop.f32.mrb[21].mxu0  ;;  %v989_v25 = vadd.f32 %v983_v10, %v941_v28 }
0x1978   :  { %v986_v27 = vpop.f32.mrb[22].mxu0 }
0x1979   :  { %998 = vrot.lane.b32.xlu0 %v996_v24, %s2047_s6  ;;  %v1735_v36 = vpop.f32.mrb[23].mxu0  ;;  %v1583_v5 = vmul.f32 -1.442695, %v989_v25 }
0x197b   :  { %1854 = vpow2.f32 %v1583_v5 }
0x1985   :  { %v1855_v18 = vpop.eup %1854 }
0x1986   :  { %v993_v30 = vadd.f32 1.0, %v1855_v18 }
0x1988   :  { %1856 = vrcp.f32 %v993_v30 }
0x1992   :  { %v1857_v31 = vpop.eup %1856 }
0x1993   :  { %v1008_v34 = vsub.f32 1.0, %v1857_v31  ;;  %v1014_v37 = vmul.f32 %v1857_v31, %v2413_v21 }
0x19eb   :  { %v999_v59 = vpop.permute.xlu0 %998 }
0x19ec   :  { %v1001_v1 = vmul.f32 %v1857_v31, %v999_v59 }
0x19ee   :  { %1003 = vrot.lane.b32.xlu1 %v1001_v1, %s2047_s6 }
0x1a60   :  { %v1004_v50 = vpop.permute.xlu1 %1003 }
0x1a61   :  { %v1006_v8 = vadd.f32 %v1004_v50, %v941_v28 }
0x1a63   :  { %1858 = vtanh.f32 %v1006_v8 }
0x1a6d   :  { %v1859_v33 = vpop.eup %1858 }
0x1a6e   :  { %1010 = vrot.lane.b32.xlu0 %v1859_v33, %s2048_s3  ;;  %v1181_v33 = vld [vmem:[#allocation2 + $0x8] sm:$0x3] }
0x1ae0   :  { %v1011_v35 = vpop.permute.xlu0 %1010 }
0x1ae1   :  { %v1013_v38 = vmul.f32 %v1011_v35, %v1008_v34 }
0x1ae3   :  { %v2430_v39 = vadd.f32 %v1014_v37, %v1013_v38 }
0x1ae5   :  { %v1022_v40 = vpack.c.bf16 %v2430_v39, %v2430_v39 }
0x1ae7   :  { %1024 = vrot.lane.b32.xlu1 %v1022_v40, %s2048_s3 }
0x1b59   :  { %v1025_v41 = vpop.permute.xlu1 %1024 }
0x1b5a   :  { %1741 = vmatmul.mubr.msk.bf16.vlgmr.msra.gmra.mrb[20].mxu1 %vm151_vm2, %v1025_v41 }
0x1b5b   :  { %1753 = vmatpush3.bf16.msra.mxu1 %v2355_v29  ;;  %1756 = vmatprep.mubr.msk.bf16.mxu1 %vm2045_vm0, %v2044_v0 }
0x1b5c   :  { %1754 = vmatprep.subr.bf16.mxu1 %v2044_v0 }
0x1b5f   :  { %1755 = vmatpush3.bf16.msra.mxu1 %v2358_v32 }
0x1b60   :  { %1768 = vmatprep.subr.bf16.mxu1 %v2044_v0 }
0x1c2d   :  { %v1063_v42 = vpop.f32.mrb[20].mxu1 }
0x1c2e   :  { %v1076_v43 = vadd.f32 %v1063_v42, %v2397_v49  ;;  %v1742_v44 = vpop.f32.mrb[21].mxu1  ;;  %v1069_v48 = vadd.f32 %v1063_v42, %v1021_v47 }
0x1c2f   :  { %v1066_v45 = vpop.f32.mrb[22].mxu1 }
0x1c30   :  { %1078 = vrot.lane.b32.xlu0 %v1076_v43, %s2047_s6  ;;  %v1743_v46 = vpop.f32.mrb[23].mxu1  ;;  %v1585_v51 = vmul.f32 -1.442695, %v1069_v48 }
0x1c32   :  { %1860 = vpow2.f32 %v1585_v51 }
0x1c3c   :  { %v1861_v52 = vpop.eup %1860 }
0x1c3d   :  { %v1073_v53 = vadd.f32 1.0, %v1861_v52 }
0x1c3f   :  { %1862 = vrcp.f32 %v1073_v53 }
0x1c49   :  { %v1863_v54 = vpop.eup %1862 }
0x1c4a   :  { %v1088_v60 = vsub.f32 1.0, %v1863_v54  ;;  %v1094_v62 = vmul.f32 %v1863_v54, %v2430_v39 }
0x1ca2   :  { %v1079_v55 = vpop.permute.xlu0 %1078 }
0x1ca3   :  { %v1081_v56 = vmul.f32 %v1863_v54, %v1079_v55 }
0x1ca5   :  { %1083 = vrot.lane.b32.xlu1 %v1081_v56, %s2047_s6 }
0x1d17   :  { %v1084_v57 = vpop.permute.xlu1 %1083 }
0x1d18   :  { %v1086_v58 = vadd.f32 %v1084_v57, %v1021_v47 }
0x1d1a   :  { %1864 = vtanh.f32 %v1086_v58 }
0x1d24   :  { %v1865_v11 = vpop.eup %1864 }
0x1d25   :  { %1090 = vrot.lane.b32.xlu0 %v1865_v11, %s2048_s3 }
0x1d97   :  { %v1091_v61 = vpop.permute.xlu0 %1090 }
0x1d98   :  { %v1093_v63 = vmul.f32 %v1091_v61, %v1088_v60  ;;  %v1261_v60 = vld [vmem:[#allocation2 + $0xa] sm:$0x3] }
0x1d9a   :  { %v2447_v2 = vadd.f32 %v1094_v62, %v1093_v63 }
0x1d9c   :  { %v1102_v13 = vpack.c.bf16 %v2447_v2, %v2447_v2 }
0x1d9e   :  { %1104 = vrot.lane.b32.xlu1 %v1102_v13, %s2048_s3 }
0x1e10   :  { %v1105_v3 = vpop.permute.xlu1 %1104 }
0x1e11   :  { %1749 = vmatmul.mubr.msk.bf16.vlgmr.msra.gmra.mrb[24].mxu0 %vm151_vm2, %v1105_v3 }
0x1e12   :  { %1761 = vmatpush3.bf16.msra.mxu0 %v2355_v29  ;;  %1764 = vmatprep.mubr.msk.bf16.mxu0 %vm2045_vm0, %v2044_v0 }
0x1e13   :  { %1762 = vmatprep.subr.bf16.mxu0 %v2044_v0 }
0x1e16   :  { %1763 = vmatpush3.bf16.msra.mxu0 %v2358_v32 }
0x1e17   :  { %1776 = vmatprep.subr.bf16.mxu0 %v2044_v0 }
0x1ee4   :  { %v1143_v4 = vpop.f32.mrb[24].mxu0 }
0x1ee5   :  { %v1156_v6 = vadd.f32 %v1143_v4, %v2397_v49  ;;  %v1750_v7 = vpop.f32.mrb[25].mxu0  ;;  %v1149_v15 = vadd.f32 %v1143_v4, %v1101_v14 }
0x1ee6   :  { %v1146_v9 = vpop.f32.mrb[26].mxu0 }
0x1ee7   :  { %1158 = vrot.lane.b32.xlu0 %v1156_v6, %s2047_s6  ;;  %v1751_v12 = vpop.f32.mrb[27].mxu0  ;;  %v1587_v16 = vmul.f32 -1.442695, %v1149_v15 }
0x1ee9   :  { %1866 = vpow2.f32 %v1587_v16 }
0x1ef3   :  { %v1867_v17 = vpop.eup %1866 }
0x1ef4   :  { %v1153_v19 = vadd.f32 1.0, %v1867_v17 }
0x1ef6   :  { %1868 = vrcp.f32 %v1153_v19 }
0x1f00   :  { %v1869_v20 = vpop.eup %1868 }
0x1f01   :  { %v1168_v27 = vsub.f32 1.0, %v1869_v20  ;;  %v1174_v28 = vmul.f32 %v1869_v20, %v2447_v2 }
0x1f59   :  { %v1159_v22 = vpop.permute.xlu0 %1158 }
0x1f5a   :  { %v1161_v23 = vmul.f32 %v1869_v20, %v1159_v22 }
0x1f5c   :  { %1163 = vrot.lane.b32.xlu1 %v1161_v23, %s2047_s6 }
0x1fce   :  { %v1164_v10 = vpop.permute.xlu1 %1163 }
0x1fcf   :  { %v1166_v24 = vadd.f32 %v1164_v10, %v1101_v14 }
0x1fd1   :  { %1870 = vtanh.f32 %v1166_v24  ;;  %v1341_v24 = vld [vmem:[#allocation2 + $0xc] sm:$0x3] }
0x1fdb   :  { %v1871_v26 = vpop.eup %1870 }
0x1fdc   :  { %1170 = vrot.lane.b32.xlu0 %v1871_v26, %s2048_s3 }
0x204e   :  { %v1171_v36 = vpop.permute.xlu0 %1170 }
0x204f   :  { %v1173_v25 = vmul.f32 %v1171_v36, %v1168_v27 }
0x2051   :  { %v2464_v5 = vadd.f32 %v1174_v28, %v1173_v25 }
0x2053   :  { %v1182_v18 = vpack.c.bf16 %v2464_v5, %v2464_v5 }
0x2055   :  { %1184 = vrot.lane.b32.xlu1 %v1182_v18, %s2048_s3 }
0x20c7   :  { %v1185_v30 = vpop.permute.xlu1 %1184 }
0x20c8   :  { %1757 = vmatmul.mubr.msk.bf16.vlgmr.msra.gmra.mrb[24].mxu1 %vm151_vm2, %v1185_v30 }
0x20c9   :  { %1769 = vmatpush3.bf16.msra.mxu1 %v2355_v29  ;;  %1772 = vmatprep.mubr.msk.bf16.mxu1 %vm2045_vm0, %v2044_v0 }
0x20ca   :  { %1770 = vmatprep.subr.bf16.mxu1 %v2044_v0 }
0x20cd   :  { %1771 = vmatpush3.bf16.msra.mxu1 %v2358_v32 }
0x219b   :  { %v1223_v31 = vpop.f32.mrb[24].mxu1 }
0x219c   :  { %v1236_v59 = vadd.f32 %v1223_v31, %v2397_v49  ;;  %v1758_v1 = vpop.f32.mrb[25].mxu1  ;;  %v1229_v34 = vadd.f32 %v1223_v31, %v1181_v33 }
0x219d   :  { %v1226_v50 = vpop.f32.mrb[26].mxu1 }
0x219e   :  { %1238 = vrot.lane.b32.xlu0 %v1236_v59, %s2047_s6  ;;  %v1759_v8 = vpop.f32.mrb[27].mxu1  ;;  %v1589_v35 = vmul.f32 -1.442695, %v1229_v34 }
0x21a0   :  { %1872 = vpow2.f32 %v1589_v35 }
0x21aa   :  { %v1873_v37 = vpop.eup %1872 }
0x21ab   :  { %v1233_v38 = vadd.f32 1.0, %v1873_v37 }
0x21ad   :  { %1874 = vrcp.f32 %v1233_v38 }
0x21b7   :  { %v1875_v40 = vpop.eup %1874 }
0x21b8   :  { %v1248_v46 = vsub.f32 1.0, %v1875_v40  ;;  %v1254_v48 = vmul.f32 %v1875_v40, %v2464_v5 }
0x2210   :  { %v1239_v41 = vpop.permute.xlu0 %1238 }
0x2211   :  { %v1241_v42 = vmul.f32 %v1875_v40, %v1239_v41 }
0x2213   :  { %1243 = vrot.lane.b32.xlu1 %v1241_v42, %s2047_s6 }
0x2285   :  { %v1244_v43 = vpop.permute.xlu1 %1243 }
0x2286   :  { %v1246_v44 = vadd.f32 %v1244_v43, %v1181_v33 }
0x2288   :  { %1876 = vtanh.f32 %v1246_v44 }
0x2292   :  { %v1877_v45 = vpop.eup %1876 }
0x2293   :  { %1250 = vrot.lane.b32.xlu0 %v1877_v45, %s2048_s3  ;;  %v1421_v45 = vld [vmem:[#allocation2 + $0xe] sm:$0x3] }
0x2305   :  { %v1251_v47 = vpop.permute.xlu0 %1250 }
0x2306   :  { %v1253_v51 = vmul.f32 %v1251_v47, %v1248_v46 }
0x2308   :  { %v2480_v52 = vadd.f32 %v1254_v48, %v1253_v51 }
0x230a   :  { %v1262_v53 = vpack.c.bf16 %v2480_v52, %v2480_v52 }
0x230c   :  { %1264 = vrot.lane.b32.xlu1 %v1262_v53, %s2048_s3 }
0x237e   :  { %v1265_v54 = vpop.permute.xlu1 %1264 }
0x237f   :  { %1765 = vmatmul.mubr.msk.bf16.vlgmr.msra.gmra.mrb[28].mxu0 %vm151_vm2, %v1265_v54 }
0x2380   :  { %1777 = vmatpush3.bf16.msra.mxu0 %v2355_v29  ;;  %1780 = vmatprep.mubr.msk.bf16.mxu0 %vm2045_vm0, %v2044_v0 }
0x2381   :  { %1778 = vmatprep.subr.bf16.mxu0 %v2044_v0 }
0x2384   :  { %1779 = vmatpush3.bf16.msra.mxu0 %v2358_v32 }
0x2452   :  { %v1303_v55 = vpop.f32.mrb[28].mxu0 }
0x2453   :  { %v1316_v56 = vadd.f32 %v1303_v55, %v2397_v49  ;;  %v1766_v57 = vpop.f32.mrb[29].mxu0  ;;  %v1309_v61 = vadd.f32 %v1303_v55, %v1261_v60 }
0x2454   :  { %v1306_v58 = vpop.f32.mrb[30].mxu0 }
0x2455   :  { %1318 = vrot.lane.b32.xlu0 %v1316_v56, %s2047_s6  ;;  %v1767_v11 = vpop.f32.mrb[31].mxu0  ;;  %v1591_v62 = vmul.f32 -1.442695, %v1309_v61 }
0x2457   :  { %1878 = vpow2.f32 %v1591_v62 }
0x2461   :  { %v1879_v29 = vpop.eup %1878 }
0x2462   :  { %v1313_v63 = vadd.f32 1.0, %v1879_v29 }
0x2464   :  { %1880 = vrcp.f32 %v1313_v63 }
0x246e   :  { %v1881_v13 = vpop.eup %1880 }
0x246f   :  { %v1328_v7 = vsub.f32 1.0, %v1881_v13  ;;  %v1334_v12 = vmul.f32 %v1881_v13, %v2480_v52 }
0x24c7   :  { %v1319_v3 = vpop.permute.xlu0 %1318 }
0x24c8   :  { %v1321_v0 = vmul.f32 %v1881_v13, %v1319_v3 }
0x24ca   :  { %1323 = vrot.lane.b32.xlu1 %v1321_v0, %s2047_s6 }
0x253c   :  { %v1324_v32 = vpop.permute.xlu1 %1323 }
0x253d   :  { %v1326_v4 = vadd.f32 %v1324_v32, %v1261_v60 }
0x253f   :  { %1882 = vtanh.f32 %v1326_v4 }
0x2549   :  { %v1883_v6 = vpop.eup %1882 }
0x254a   :  { %1330 = vrot.lane.b32.xlu0 %v1883_v6, %s2048_s3 }
0x25bc   :  { %v1331_v9 = vpop.permute.xlu0 %1330 }
0x25bd   :  { %v1333_v14 = vmul.f32 %v1331_v9, %v1328_v7 }
0x25bf   :  { %v2496_v15 = vadd.f32 %v1334_v12, %v1333_v14 }
0x25c1   :  { %v1342_v16 = vpack.c.bf16 %v2496_v15, %v2496_v15 }
0x25c3   :  { %1344 = vrot.lane.b32.xlu1 %v1342_v16, %s2048_s3 }
0x2635   :  { %v1345_v17 = vpop.permute.xlu1 %1344 }
0x2636   :  { %1773 = vmatmul.mubr.msk.bf16.vlgmr.msra.gmra.mrb[28].mxu1 %vm151_vm2, %v1345_v17 }
0x2709   :  { %v1383_v19 = vpop.f32.mrb[28].mxu1 }
0x270a   :  { %v1396_v20 = vadd.f32 %v1383_v19, %v2397_v49  ;;  %v1774_v22 = vpop.f32.mrb[29].mxu1  ;;  %v1389_v26 = vadd.f32 %v1383_v19, %v1341_v24 }
0x270b   :  { %v1386_v23 = vpop.f32.mrb[30].mxu1 }
0x270c   :  { %1398 = vrot.lane.b32.xlu0 %v1396_v20, %s2047_s6  ;;  %v1775_v10 = vpop.f32.mrb[31].mxu1  ;;  %v1593_v27 = vmul.f32 -1.442695, %v1389_v26 }
0x270e   :  { %1884 = vpow2.f32 %v1593_v27 }
0x2718   :  { %v1885_v36 = vpop.eup %1884 }
0x2719   :  { %v1393_v28 = vadd.f32 1.0, %v1885_v36 }
0x271b   :  { %1886 = vrcp.f32 %v1393_v28 }
0x2725   :  { %v1887_v25 = vpop.eup %1886 }
0x2726   :  { %v1408_v50 = vsub.f32 1.0, %v1887_v25  ;;  %v1414_v33 = vmul.f32 %v1887_v25, %v2496_v15 }
0x277e   :  { %v1399_v18 = vpop.permute.xlu0 %1398 }
0x277f   :  { %v1401_v30 = vmul.f32 %v1887_v25, %v1399_v18 }
0x2781   :  { %1403 = vrot.lane.b32.xlu1 %v1401_v30, %s2047_s6 }
0x27f3   :  { %v1404_v31 = vpop.permute.xlu1 %1403 }
0x27f4   :  { %v1406_v59 = vadd.f32 %v1404_v31, %v1341_v24 }
0x27f6   :  { %1888 = vtanh.f32 %v1406_v59 }
0x2800   :  { %v1889_v1 = vpop.eup %1888 }
0x2801   :  { %1410 = vrot.lane.b32.xlu0 %v1889_v1, %s2048_s3 }
0x2873   :  { %v1411_v8 = vpop.permute.xlu0 %1410 }
0x2874   :  { %v1413_v34 = vmul.f32 %v1411_v8, %v1408_v50 }
0x2876   :  { %v1415_v35 = vadd.f32 %v1414_v33, %v1413_v34 }
0x2878   :  { %v1422_v37 = vpack.c.bf16 %v1415_v35, %v1415_v35 }
0x287a   :  { %1424 = vrot.lane.b32.xlu1 %v1422_v37, %s2048_s3 }
0x28ec   :  { %v1425_v38 = vpop.permute.xlu1 %1424 }
0x28ed   :  { %1781 = vmatmul.mubr.msk.bf16.vlgmr.msra.gmra.mrb[32].mxu0 %vm151_vm2, %v1425_v38 }
0x29c0   :  { %v1463_v40 = vpop.f32.mrb[32].mxu0 }
0x29c1   :  { %v1476_v41 = vadd.f32 %v1463_v40, %v2397_v49  ;;  %v1782_v42 = vpop.f32.mrb[33].mxu0  ;;  %v1469_v46 = vadd.f32 %v1463_v40, %v1421_v45 }
0x29c2   :  { %v1466_v43 = vpop.f32.mrb[34].mxu0 }
0x29c3   :  { %1478 = vrot.lane.b32.xlu0 %v1476_v41, %s2047_s6  ;;  %v1783_v44 = vpop.f32.mrb[35].mxu0  ;;  %v1595_v47 = vmul.f32 -1.442695, %v1469_v46 }
0x29c5   :  { %1890 = vpow2.f32 %v1595_v47 }
0x29cf   :  { %v1891_v48 = vpop.eup %1890 }
0x29d0   :  { %v1473_v51 = vadd.f32 1.0, %v1891_v48 }
0x29d2   :  { %1892 = vrcp.f32 %v1473_v51 }
0x29dc   :  { %v1893_v53 = vpop.eup %1892 }
0x29dd   :  { %v1488_v61 = vsub.f32 1.0, %v1893_v53  ;;  %v1494_v29 = vmul.f32 %v1893_v53, %v1415_v35 }
0x2a35   :  { %v1479_v54 = vpop.permute.xlu0 %1478 }
0x2a36   :  { %v1481_v55 = vmul.f32 %v1893_v53, %v1479_v54 }
0x2a38   :  { %1483 = vrot.lane.b32.xlu1 %v1481_v55, %s2047_s6 }
0x2a3c   :  { %1017 = vrot.lane.b32.xlu1 %v2430_v39, %s2048_s3 }
0x2a40   :  { %1097 = vrot.lane.b32.xlu1 %v2447_v2, %s2048_s3 }
0x2a44   :  { %1177 = vrot.lane.b32.xlu1 %v2464_v5, %s2048_s3 }
0x2a48   :  { %937 = vrot.lane.b32.xlu1 %v2413_v21, %s2048_s3 }
0x2aaa   :  { %v1484_v49 = vpop.permute.xlu1 %1483 }
0x2aab   :  { %v1486_v56 = vadd.f32 %v1484_v49, %v1421_v45 }
0x2aad   :  { %1894 = vtanh.f32 %v1486_v56 }
0x2aae   :  { %v1018_v57 = vpop.permute.xlu1 %1017 }
0x2aaf   :  { %1020 = vst.msk [vmem:[#allocation3 + $0x2] sm:$0x3] %vm229_vm3, %v1018_v57 }
0x2ab2   :  { %v1098_v58 = vpop.permute.xlu1 %1097 }
0x2ab3   :  { %1100 = vst.msk [vmem:[#allocation3 + $0x4] sm:$0x3] %vm229_vm3, %v1098_v58 }
0x2ab6   :  { %v1178_v11 = vpop.permute.xlu1 %1177  ;;  %v1502_v39 = vld [vmem:[#allocation3 + $0x2] sm:$0x3] }
0x2ab7   :  { %v1895_v60 = vpop.eup %1894  ;;  %1180 = vst.msk [vmem:[#allocation3 + $0x6] sm:$0x3] %vm229_vm3, %v1178_v11  ;;  %1510 = vrot.lane.b32.xlu1 %v1502_v39, %s2049_s5 }
0x2ab8   :  { %1490 = vrot.lane.b32.xlu0 %v1895_v60, %s2048_s3 }
0x2aba   :  { %v938_v2 = vpop.permute.xlu1 %937  ;;  %v1503_v21 = vld [vmem:[#allocation3 + $0x4] sm:$0x3] }
0x2abb   :  { %940 = vst.msk [vmem:[#allocation3] sm:$0x3] %vm229_vm3, %v938_v2  ;;  %1514 = vrot.lane.b32.xlu1 %v1503_v21, %s2047_s6 }
0x2abc   :  { %1337 = vrot.lane.b32.xlu0 %v2496_v15, %s2048_s3 }
0x2abe   :  { %v1504_v5 = vld [vmem:[#allocation3 + $0x6] sm:$0x3] }
0x2abf   :  { %1518 = vrot.lane.b32.xlu1 %v1504_v5, %s2048_s3 }
0x2ac0   :  { %1417 = vrot.lane.b32.xlu0 %v1415_v35, %s2048_s3 }
0x2ac2   :  { %v1501_v19 = vld [vmem:[#allocation3] sm:$0x3] }
0x2b29   :  { %v1511_v12 = vpop.permute.xlu1 %1510 }
0x2b2a   :  { %v1491_v62 = vpop.permute.xlu0 %1490  ;;  %v1533_v22 = vsel %vm151_vm2, %v1501_v19, %v1511_v12 }
0x2b2b   :  { %v1493_v63 = vmul.f32 %v1491_v62, %v1488_v61 }
0x2b2d   :  { %v1495_v13 = vadd.f32 %v1494_v29, %v1493_v63  ;;  %v1515_v15 = vpop.permute.xlu1 %1514 }
0x2b2e   :  { %v1338_v3 = vpop.permute.xlu0 %1337  ;;  %v1535_v23 = vsel %vm1534_vm4, %v1533_v22, %v1515_v15 }
0x2b2f   :  { %1340 = vst.msk [vmem:[#allocation3 + $0xa] sm:$0x3] %vm229_vm3, %v1338_v3  ;;  %1497 = vrot.lane.b32.xlu0 %v1495_v13, %s2048_s3 }
0x2b31   :  { %v1519_v20 = vpop.permute.xlu1 %1518 }
0x2b32   :  { %v1418_v0 = vpop.permute.xlu0 %1417  ;;  %v1536_v26 = vsel %vm135_vm1, %v1535_v23, %v1519_v20 }
0x2b33   :  { %1420 = vst.msk [vmem:[#allocation3 + $0xc] sm:$0x3] %vm229_vm3, %v1418_v0  ;;  %1257 = vrot.lane.b32.xlu0 %v2480_v52, %s2048_s3 }
0x2b36   :  { %v1506_v32 = vld [vmem:[#allocation3 + $0xa] sm:$0x3] }
0x2b37   :  { %1522 = vrot.lane.b32.xlu0 %v1506_v32, %s2049_s5 }
0x2b3a   :  { %v1507_v4 = vld [vmem:[#allocation3 + $0xc] sm:$0x3] }
0x2b3b   :  { %1526 = vrot.lane.b32.xlu0 %v1507_v4, %s2047_s6 }
0x2ba1   :  { %v1498_v6 = vpop.permute.xlu0 %1497 }
0x2ba2   :  { %1500 = vst.msk [vmem:[#allocation3 + $0xe] sm:$0x3] %vm229_vm3, %v1498_v6 }
0x2ba5   :  { %v1258_v7 = vpop.permute.xlu0 %1257 }
0x2ba6   :  { %1260 = vst.msk [vmem:[#allocation3 + $0x8] sm:$0x3] %vm229_vm3, %v1258_v7 }
0x2ba9   :  { %v1508_v9 = vld [vmem:[#allocation3 + $0xe] sm:$0x3]  ;;  %v1523_v14 = vpop.permute.xlu0 %1522 }
0x2baa   :  { %1530 = vrot.lane.b32.xlu0 %v1508_v9, %s2048_s3 }
0x2bad   :  { %v1505_v16 = vld [vmem:[#allocation3 + $0x8] sm:$0x3]  ;;  %v1527_v17 = vpop.permute.xlu0 %1526 }
0x2bae   :  { %v1537_v52 = vsel %vm151_vm2, %v1505_v16, %v1523_v14 }
0x2baf   :  { %v1538_v10 = vsel %vm1534_vm4, %v1537_v52, %v1527_v17 }
0x2c1c   :  { %v1531_v24 = vpop.permute.xlu0 %1530 }
0x2c1d   :  { %v1539_v27 = vsel %vm135_vm1, %v1538_v10, %v1531_v24 }
0x2c1e   :  { %v1542_v36 = vcombine.low %v1536_v26, %v1539_v27 }
0x2c20   :  { %1596 = vst.sshfl [vmem:[%s2555_s9] sm:$0x33 pattern:$0x76325410] %v1542_v36 }
0x2c21   :  { %1556 = vsyncpa [#allocation5], 1 }
0x2c22   :  { %1557 = vsyncpa [#allocation7], 1 }
0x2c23   :  { %1558 = vsyncpa [#allocation10], 1 }
0x2c24   :  { %1559 = vsyncpa [#allocation13], 1 }

</bundles_post_ra>
